<compile_context>
chip_gen: v6e
topology: v6e:2x2x1
jax: 0.10.0
libtpu: 0.0.40
codegen_flags: <defaults>
</compile_context>

<pallas_src>
import functools

import numpy as np
import jax
import jax.numpy as jnp
from jax.experimental import pallas as pl
from jax.experimental.pallas import tpu as pltpu


# ---------------------------------------------------------------------------
# Fused Pallas kernel: the whole encoder + decoder forward pass.
# One lane-dense matmul per layer; bf16 MXU inputs, f32 accumulate + epilogue.
# ---------------------------------------------------------------------------
def _autoencoder_kernel(x_ref,
                        a1_ref, b1_ref,
                        a2_ref, b2_ref,
                        a3_ref, b3_ref,
                        a4_ref, b4_ref,
                        o_ref):
    def layer(h_bf16, a_ref, b_ref, act):
        acc = jnp.dot(h_bf16, a_ref[...], preferred_element_type=jnp.float32)
        acc = acc + b_ref[...]              # (1, OH*OW*Cout) broadcast over rows
        if act == "relu":
            return jnp.maximum(acc, 0.0)    # VPU, f32
        return jnp.tanh(acc)                # EUP, f32

    h = layer(x_ref[...], a1_ref, b1_ref, "relu")                 # Conv2d(3,16,s3,p1)
    h = layer(h.astype(jnp.bfloat16), a2_ref, b2_ref, "relu")     # Conv2d(16,8,s2,p1)
    h = layer(h.astype(jnp.bfloat16), a3_ref, b3_ref, "relu")     # ConvT(8,16,s2,p1)
    h = layer(h.astype(jnp.bfloat16), a4_ref, b4_ref, "tanh")     # ConvT(16,3,s3,p1,op1)
    o_ref[...] = h.astype(o_ref.dtype)


def _fused_forward(x_mat, prep, tb):
    """x_mat: (batch, H*W*Cin) bf16 -> (batch, OH*OW*Cout) f32, lane-dense."""
    batch, k_in = x_mat.shape
    n_out = prep["a4"].shape[1]
    grid = (batch // tb,)

    def full_spec(arr):
        # Constant block index: operator stays VMEM-resident across grid steps.
        return pl.BlockSpec(arr.shape, lambda i: (0, 0))

    operand_names = ("a1", "b1", "a2", "b2", "a3", "b3", "a4", "b4")
    args = (x_mat,) + tuple(prep[k] for k in operand_names)
    in_specs = [pl.BlockSpec((tb, k_in), lambda i: (i, 0))]
    in_specs += [full_spec(prep[k]) for k in operand_names]

    return pl.pallas_call(
        _autoencoder_kernel,
        out_shape=jax.ShapeDtypeStruct((batch, n_out), jnp.float32),
        grid=grid,
        in_specs=in_specs,
        out_specs=pl.BlockSpec((tb, n_out), lambda i: (i, 0)),
        compiler_params=pltpu.CompilerParams(
            dimension_semantics=("parallel",),        # shard batch across TCs (v7x)
            vmem_limit_bytes=32 * 1024 * 1024),       # safe on 64 MiB v7x VMEM
    )(*args)


# ---------------------------------------------------------------------------
# One-time preprocessing: fold im2col/scatter + tap weights into one dense,
# batch-independent operator per layer (channels-last, row-major (h, w, c)).
# ---------------------------------------------------------------------------
def _conv_operator(ih, iw, stride, pad, w):
    """PyTorch Conv2d weight (Cout,Cin,KH,KW) -> A: (IH*IW*Cin, OH*OW*Cout)."""
    w = np.asarray(w, np.float32)
    cout, cin, kh, kw = w.shape
    oh = (ih + 2 * pad - kh) // stride + 1
    ow = (iw + 2 * pad - kw) // stride + 1
    a = np.zeros((ih * iw * cin, oh * ow * cout), np.float32)
    for y in range(oh):
        for x in range(ow):
            ro = y * ow + x
            for i in range(kh):
                for j in range(kw):
                    yy, xx = y * stride - pad + i, x * stride - pad + j
                    if 0 <= yy < ih and 0 <= xx < iw:
                        ri = yy * iw + xx
                        a[ri * cin:(ri + 1) * cin,
                          ro * cout:(ro + 1) * cout] += w[:, :, i, j].T
    return a, oh, ow


def _deconv_operator(ih, iw, stride, pad, out_pad, w):
    """PyTorch ConvTranspose2d weight (Cin,Cout,KH,KW) -> A: (IH*IW*Cin, OH*OW*Cout)."""
    w = np.asarray(w, np.float32)
    cin, cout, kh, kw = w.shape
    oh = (ih - 1) * stride - 2 * pad + kh + out_pad
    ow = (iw - 1) * stride - 2 * pad + kw + out_pad
    a = np.zeros((ih * iw * cin, oh * ow * cout), np.float32)
    for y in range(ih):
        for x in range(iw):
            ri = y * iw + x
            for i in range(kh):
                for j in range(kw):
                    yy, xx = y * stride - pad + i, x * stride - pad + j
                    if 0 <= yy < oh and 0 <= xx < ow:
                        ro = yy * ow + xx
                        a[ri * cin:(ri + 1) * cin,
                          ro * cout:(ro + 1) * cout] += w[:, :, i, j]
    return a, oh, ow


def prepare_params(params, height, width):
    """One-time transform of PyTorch-layout params into kernel operands."""
    a1, h1, w1 = _conv_operator(height, width, 3, 1, params["w1"])
    a2, h2, w2 = _conv_operator(h1, w1, 2, 1, params["w2"])
    a3, h3, w3 = _deconv_operator(h2, w2, 2, 1, 0, params["w3"])
    a4, h4, w4 = _deconv_operator(h3, w3, 3, 1, 1, params["w4"])

    def bias_row(b, npix):
        # bias replicated per output pixel -> (1, OH*OW*Cout), kept in f32
        return jnp.asarray(np.tile(np.asarray(b, np.float32), npix)[None, :])

    prep = {
        "a1": jnp.asarray(a1, jnp.bfloat16), "b1": bias_row(params["b1"], h1 * w1),
        "a2": jnp.asarray(a2, jnp.bfloat16), "b2": bias_row(params["b2"], h2 * w2),
        "a3": jnp.asarray(a3, jnp.bfloat16), "b3": bias_row(params["b3"], h3 * w3),
        "a4": jnp.asarray(a4, jnp.bfloat16), "b4": bias_row(params["b4"], h4 * w4),
    }
    return prep, (h4, w4)


# ---------------------------------------------------------------------------
# AutoEncoder forward (module boundary: NCHW in, NCHW out).
# ---------------------------------------------------------------------------
@functools.partial(jax.jit, static_argnums=(2,))
def autoencoder_forward(prep, x, out_hw):
    n, c, h, w = x.shape
    oh, ow = out_hw
    tb = 8 if n % 8 == 0 else n                      # batch tile for the parallel grid
    x_mat = jnp.transpose(x, (0, 2, 3, 1)).reshape(n, h * w * c).astype(jnp.bfloat16)
    out_mat = _fused_forward(x_mat, prep, tb)        # (n, oh*ow*3), lane-dense
    return jnp.transpose(out_mat.reshape(n, oh, ow, -1), (0, 3, 1, 2))


def init_params(key):
    """PyTorch-layout parameters (Conv: (Cout,Cin,KH,KW); ConvT: (Cin,Cout,KH,KW))."""
    def uinit(k, shape, fan_in):
        s = 1.0 / jnp.sqrt(fan_in)
        return jax.random.uniform(k, shape, jnp.float32, -s, s)

    ks = jax.random.split(key, 8)
    return {
        # encoder
        "w1": uinit(ks[0], (16, 3, 3, 3), 3 * 9),   "b1": uinit(ks[1], (16,), 3 * 9),
        "w2": uinit(ks[2], (8, 16, 3, 3), 16 * 9),  "b2": uinit(ks[3], (8,), 16 * 9),
        # decoder (ConvTranspose2d weight layout: (Cin, Cout, KH, KW))
        "w3": uinit(ks[4], (8, 16, 3, 3), 8 * 9),   "b3": uinit(ks[5], (16,), 8 * 9),
        "w4": uinit(ks[6], (16, 3, 3, 3), 16 * 9),  "b4": uinit(ks[7], (3,), 16 * 9),
    }


# ---------------------------------------------------------------------------
# Direct NumPy reference of the PyTorch module (for the correctness check).
# ---------------------------------------------------------------------------
def _conv2d_ref(x, w, b, stride, pad):
    n, cin, ih, iw = x.shape
    cout, _, kh, kw = w.shape
    oh = (ih + 2 * pad - kh) // stride + 1
    ow = (iw + 2 * pad - kw) // stride + 1
    out = np.broadcast_to(b.reshape(1, cout, 1, 1), (n, cout, oh, ow)).astype(np.float64).copy()
    for y in range(oh):
        for xo in range(ow):
            for i in range(kh):
                for j in range(kw):
                    yy, xx = y * stride - pad + i, xo * stride - pad + j
                    if 0 <= yy < ih and 0 <= xx < iw:
                        out[:, :, y, xo] += x[:, :, yy, xx] @ w[:, :, i, j].T
    return out


def _deconv2d_ref(x, w, b, stride, pad, out_pad):
    n, cin, ih, iw = x.shape
    _, cout, kh, kw = w.shape
    oh = (ih - 1) * stride - 2 * pad + kh + out_pad
    ow = (iw - 1) * stride - 2 * pad + kw + out_pad
    out = np.broadcast_to(b.reshape(1, cout, 1, 1), (n, cout, oh, ow)).astype(np.float64).copy()
    for y in range(ih):
        for xo in range(iw):
            for i in range(kh):
                for j in range(kw):
                    yy, xx = y * stride - pad + i, xo * stride - pad + j
                    if 0 <= yy < oh and 0 <= xx < ow:
                        out[:, :, yy, xx] += x[:, :, y, xo] @ w[:, :, i, j]
    return out


def _reference_forward(params, x):
    p = {k: np.asarray(v, np.float64) for k, v in params.items()}
    a = np.asarray(x, np.float64)
    a = np.maximum(_conv2d_ref(a, p["w1"], p["b1"], 3, 1), 0.0)
    a = np.maximum(_conv2d_ref(a, p["w2"], p["b2"], 2, 1), 0.0)
    a = np.maximum(_deconv2d_ref(a, p["w3"], p["b3"], 2, 1, 0), 0.0)
    a = np.tanh(_deconv2d_ref(a, p["w4"], p["b4"], 3, 1, 1))
    return a


if __name__ == "__main__":
    key = jax.random.PRNGKey(0)
    kparams, kx = jax.random.split(key)
    params = init_params(kparams)

    batch, height, width = 2, 16, 16
    x = jax.random.normal(kx, (batch, 3, height, width), jnp.float32)

    # NOTE: prepare_params bakes H/W into the folded operators; call
    # autoencoder_forward only with inputs matching the shapes it was built for.
    prep, out_hw = prepare_params(params, height, width)
    y = autoencoder_forward(prep, x, out_hw)
    y = jax.block_until_ready(y)

    # shape trace: 16 -> conv(s3,p1) 6 -> conv(s2,p1) 3
    #              -> deconv(s2,p1) 5 -> deconv(s3,p1,op1) 14
    assert y.shape == (batch, 3, 14, 14), y.shape
    assert bool(jnp.all(jnp.isfinite(y)))

    # numerical check against a direct NumPy implementation of the PyTorch module
    # (bf16 MXU inputs introduce ~1e-3 relative error; well inside tolerance)
    y_ref = _reference_forward(params, np.asarray(x))
    err = float(np.max(np.abs(np.asarray(y, np.float64) - y_ref)))
    assert err < 5e-2, f"max abs error vs reference: {err}"

    print("KERNEL_OK")
</pallas_src>

<mosaic_0001>
module attributes {stable_mosaic.version = 11 : i64} {
  func.func @_autoencoder_kernel(%arg0: i32, %arg1: memref<2x768xbf16, #tpu.memory_space<vmem>>, %arg2: memref<768x576xbf16, #tpu.memory_space<vmem>>, %arg3: memref<1x576xf32, #tpu.memory_space<vmem>>, %arg4: memref<576x72xbf16, #tpu.memory_space<vmem>>, %arg5: memref<1x72xf32, #tpu.memory_space<vmem>>, %arg6: memref<72x400xbf16, #tpu.memory_space<vmem>>, %arg7: memref<1x400xf32, #tpu.memory_space<vmem>>, %arg8: memref<400x588xbf16, #tpu.memory_space<vmem>>, %arg9: memref<1x588xf32, #tpu.memory_space<vmem>>, %arg10: memref<2x588xf32, #tpu.memory_space<vmem>>) attributes {dimension_semantics = [#tpu.dimension_semantics<parallel>], iteration_bounds = array<i64: 1>, scalar_prefetch = 0 : i64, scratch_operands = 0 : i64, tpu.core_type = #tpu.core_type<tc>, window_params = [{transform_indices = @transform_0, window_bounds = array<i64: 2, 768>}, {pipeline_mode = #tpu.pipeline_mode<synchronous>, transform_indices = @transform_1, window_bounds = array<i64: 768, 576>}, {pipeline_mode = #tpu.pipeline_mode<synchronous>, transform_indices = @transform_2, window_bounds = array<i64: 1, 576>}, {pipeline_mode = #tpu.pipeline_mode<synchronous>, transform_indices = @transform_3, window_bounds = array<i64: 576, 72>}, {pipeline_mode = #tpu.pipeline_mode<synchronous>, transform_indices = @transform_4, window_bounds = array<i64: 1, 72>}, {pipeline_mode = #tpu.pipeline_mode<synchronous>, transform_indices = @transform_5, window_bounds = array<i64: 72, 400>}, {pipeline_mode = #tpu.pipeline_mode<synchronous>, transform_indices = @transform_6, window_bounds = array<i64: 1, 400>}, {pipeline_mode = #tpu.pipeline_mode<synchronous>, transform_indices = @transform_7, window_bounds = array<i64: 400, 588>}, {pipeline_mode = #tpu.pipeline_mode<synchronous>, transform_indices = @transform_8, window_bounds = array<i64: 1, 588>}, {transform_indices = @transform_9, window_bounds = array<i64: 2, 588>}]} {
    %c0 = arith.constant 0 : index
    %c0_0 = arith.constant 0 : index
    %0 = vector.load %arg1[%c0, %c0_0] : memref<2x768xbf16, #tpu.memory_space<vmem>>, vector<2x768xbf16>
    %c0_1 = arith.constant 0 : index
    %c0_2 = arith.constant 0 : index
    %1 = vector.load %arg2[%c0_1, %c0_2] : memref<768x576xbf16, #tpu.memory_space<vmem>>, vector<768x576xbf16>
    %cst = arith.constant dense<0.000000e+00> : vector<2x576xf32>
    %2 = tpu.matmul %0, %1, %cst {dimension_numbers = #tpu.dot_dimension_numbers<[1], [0], [0], [1], [0, 0, 1, 1], [], []>} : vector<2x768xbf16>, vector<768x576xbf16>, vector<2x576xf32> -> vector<2x576xf32>
    %c0_3 = arith.constant 0 : index
    %c0_4 = arith.constant 0 : index
    %3 = vector.load %arg3[%c0_3, %c0_4] : memref<1x576xf32, #tpu.memory_space<vmem>>, vector<1x576xf32>
    %4 = vector.broadcast %3 : vector<1x576xf32> to vector<2x576xf32>
    %5 = arith.addf %2, %4 : vector<2x576xf32>
    %cst_5 = arith.constant 0.000000e+00 : f32
    %6 = vector.broadcast %cst_5 : f32 to vector<2x576xf32>
    %7 = arith.maximumf %5, %6 : vector<2x576xf32>
    %8 = arith.truncf %7 : vector<2x576xf32> to vector<2x576xbf16>
    %c0_6 = arith.constant 0 : index
    %c0_7 = arith.constant 0 : index
    %9 = vector.load %arg4[%c0_6, %c0_7] : memref<576x72xbf16, #tpu.memory_space<vmem>>, vector<576x72xbf16>
    %cst_8 = arith.constant dense<0.000000e+00> : vector<2x72xf32>
    %10 = tpu.matmul %8, %9, %cst_8 {dimension_numbers = #tpu.dot_dimension_numbers<[1], [0], [0], [1], [0, 0, 1, 1], [], []>} : vector<2x576xbf16>, vector<576x72xbf16>, vector<2x72xf32> -> vector<2x72xf32>
    %c0_9 = arith.constant 0 : index
    %c0_10 = arith.constant 0 : index
    %11 = vector.load %arg5[%c0_9, %c0_10] : memref<1x72xf32, #tpu.memory_space<vmem>>, vector<1x72xf32>
    %12 = vector.broadcast %11 : vector<1x72xf32> to vector<2x72xf32>
    %13 = arith.addf %10, %12 : vector<2x72xf32>
    %cst_11 = arith.constant 0.000000e+00 : f32
    %14 = vector.broadcast %cst_11 : f32 to vector<2x72xf32>
    %15 = arith.maximumf %13, %14 : vector<2x72xf32>
    %16 = arith.truncf %15 : vector<2x72xf32> to vector<2x72xbf16>
    %c0_12 = arith.constant 0 : index
    %c0_13 = arith.constant 0 : index
    %17 = vector.load %arg6[%c0_12, %c0_13] : memref<72x400xbf16, #tpu.memory_space<vmem>>, vector<72x400xbf16>
    %cst_14 = arith.constant dense<0.000000e+00> : vector<2x400xf32>
    %18 = tpu.matmul %16, %17, %cst_14 {dimension_numbers = #tpu.dot_dimension_numbers<[1], [0], [0], [1], [0, 0, 1, 1], [], []>} : vector<2x72xbf16>, vector<72x400xbf16>, vector<2x400xf32> -> vector<2x400xf32>
    %c0_15 = arith.constant 0 : index
    %c0_16 = arith.constant 0 : index
    %19 = vector.load %arg7[%c0_15, %c0_16] : memref<1x400xf32, #tpu.memory_space<vmem>>, vector<1x400xf32>
    %20 = vector.broadcast %19 : vector<1x400xf32> to vector<2x400xf32>
    %21 = arith.addf %18, %20 : vector<2x400xf32>
    %cst_17 = arith.constant 0.000000e+00 : f32
    %22 = vector.broadcast %cst_17 : f32 to vector<2x400xf32>
    %23 = arith.maximumf %21, %22 : vector<2x400xf32>
    %24 = arith.truncf %23 : vector<2x400xf32> to vector<2x400xbf16>
    %c0_18 = arith.constant 0 : index
    %c0_19 = arith.constant 0 : index
    %25 = vector.load %arg8[%c0_18, %c0_19] : memref<400x588xbf16, #tpu.memory_space<vmem>>, vector<400x588xbf16>
    %cst_20 = arith.constant dense<0.000000e+00> : vector<2x588xf32>
    %26 = tpu.matmul %24, %25, %cst_20 {dimension_numbers = #tpu.dot_dimension_numbers<[1], [0], [0], [1], [0, 0, 1, 1], [], []>} : vector<2x400xbf16>, vector<400x588xbf16>, vector<2x588xf32> -> vector<2x588xf32>
    %c0_21 = arith.constant 0 : index
    %c0_22 = arith.constant 0 : index
    %27 = vector.load %arg9[%c0_21, %c0_22] : memref<1x588xf32, #tpu.memory_space<vmem>>, vector<1x588xf32>
    %28 = vector.broadcast %27 : vector<1x588xf32> to vector<2x588xf32>
    %29 = arith.addf %26, %28 : vector<2x588xf32>
    %30 = math.tanh %29 : vector<2x588xf32>
    %c0_23 = arith.constant 0 : index
    %c0_24 = arith.constant 0 : index
    %31 = vector.load %arg10[%c0_23, %c0_24] : memref<2x588xf32, #tpu.memory_space<vmem>>, vector<2x588xf32>
    tpu.vector_store %arg10[%c0_23, %c0_24], %30 {strides = array<i32>} : memref<2x588xf32, #tpu.memory_space<vmem>>, vector<2x588xf32>,
    return
  }
  func.func @transform_0(%arg0: i32) -> (i32, i32) {
    %c0_i32 = arith.constant 0 : i32
    %c0_i32_0 = arith.constant 0 : i32
    return %arg0, %c0_i32 : i32, i32
  }
  func.func @transform_1(%arg0: i32) -> (i32, i32) {
    %c0_i32 = arith.constant 0 : i32
    %c0_i32_0 = arith.constant 0 : i32
    %c0_i32_1 = arith.constant 0 : i32
    return %c0_i32, %c0_i32_0 : i32, i32
  }
  func.func @transform_2(%arg0: i32) -> (i32, i32) {
    %c0_i32 = arith.constant 0 : i32
    %c0_i32_0 = arith.constant 0 : i32
    %c0_i32_1 = arith.constant 0 : i32
    return %c0_i32, %c0_i32_0 : i32, i32
  }
  func.func @transform_3(%arg0: i32) -> (i32, i32) {
    %c0_i32 = arith.constant 0 : i32
    %c0_i32_0 = arith.constant 0 : i32
    %c0_i32_1 = arith.constant 0 : i32
    return %c0_i32, %c0_i32_0 : i32, i32
  }
  func.func @transform_4(%arg0: i32) -> (i32, i32) {
    %c0_i32 = arith.constant 0 : i32
    %c0_i32_0 = arith.constant 0 : i32
    %c0_i32_1 = arith.constant 0 : i32
    return %c0_i32, %c0_i32_0 : i32, i32
  }
  func.func @transform_5(%arg0: i32) -> (i32, i32) {
    %c0_i32 = arith.constant 0 : i32
    %c0_i32_0 = arith.constant 0 : i32
    %c0_i32_1 = arith.constant 0 : i32
    return %c0_i32, %c0_i32_0 : i32, i32
  }
  func.func @transform_6(%arg0: i32) -> (i32, i32) {
    %c0_i32 = arith.constant 0 : i32
    %c0_i32_0 = arith.constant 0 : i32
    %c0_i32_1 = arith.constant 0 : i32
    return %c0_i32, %c0_i32_0 : i32, i32
  }
  func.func @transform_7(%arg0: i32) -> (i32, i32) {
    %c0_i32 = arith.constant 0 : i32
    %c0_i32_0 = arith.constant 0 : i32
    %c0_i32_1 = arith.constant 0 : i32
    return %c0_i32, %c0_i32_0 : i32, i32
  }
  func.func @transform_8(%arg0: i32) -> (i32, i32) {
    %c0_i32 = arith.constant 0 : i32
    %c0_i32_0 = arith.constant 0 : i32
    %c0_i32_1 = arith.constant 0 : i32
    return %c0_i32, %c0_i32_0 : i32, i32
  }
  func.func @transform_9(%arg0: i32) -> (i32, i32) {
    %c0_i32 = arith.constant 0 : i32
    %c0_i32_0 = arith.constant 0 : i32
    return %arg0, %c0_i32 : i32, i32
  }
}

</mosaic_0001>

<bundles_post_ra>
// kernel: autoencoder_forward.1
= control target key start
LH: loop header
LB: loop body
LE: loop exit
PB: predicated region body
PF: predicated region fallthrough
CT: control target
= control target key end

     0   :  { %v324_v35 = vlaneseq  ;;  %v4973_v36 = vmov 1966171168   ;;  %vm4975_vm0 = vmmov 0   ;;  %vm2322_vm1 = vcmask 523264   ;;  %s6414_s1 = inlined_call_operand.vmem [shape: bf16[768,576], index: 1, kind: input, shape index: {}]   ;;  %s6415_s0 = inlined_call_operand.vmem [shape: bf16[2,768], index: 0, kind: input, shape index: {}]   ;;  %s6416_s3 = inlined_call_operand.vmem [shape: bf16[576,72], index: 3, kind: input, shape index: {}]   ;;  %s6417_s2 = inlined_call_operand.vmem [shape: f32[1,576], index: 2, kind: input, shape index: {}]   ;;  %s6418_s5 = inlined_call_operand.vmem [shape: bf16[72,400], index: 5, kind: input, shape index: {}]   ;;  %s6419_s7 = inlined_call_operand.vmem [shape: bf16[400,588], index: 7, kind: input, shape index: {}]   ;;  %s6420_s4 = inlined_call_operand.vmem [shape: f32[1,72], index: 4, kind: input, shape index: {}]   ;;  %s6421_s6 = inlined_call_operand.vmem [shape: f32[1,400], index: 6, kind: input, shape index: {}]   ;;  %s6422_s8 = inlined_call_operand.vmem [shape: f32[1,588], index: 8, kind: input, shape index: {}]   ;;  %s6423_s9 = inlined_call_operand.vmem [shape: f32[2,588], index: 9, kind: output, shape index: {}]  }
   0x1   :  { %v4387_v0 = vld [vmem:[%s6414_s1 + $0x11c] ss:$20 sps:$4 sm:$0xff]   ;;  %v4389_v1 = vld [vmem:[%s6414_s1 + $0x118] ss:$20 sps:$4 sm:$0xff]   ;;  %v4393_v4 = vld [vmem:[%s6414_s1 + $0xf4] ss:$20 sps:$4 sm:$0xff]   ;;  %v352_v37 = vunpack.c.l.s4 %v4973_v36 }
   0x2   :  { %1651 = vmatprep.subr.bf16.mxu0 %v4387_v0  ;;  %v4390_v2 = vld [vmem:[%s6414_s1 + $0x39c] ss:$20 sps:$4 sm:$0xff]   ;;  %v4392_v3 = vld [vmem:[%s6414_s1 + $0x398] ss:$20 sps:$4 sm:$0xff]   ;;  %v4396_v6 = vld [vmem:[%s6414_s1 + $0x374] ss:$20 sps:$4 sm:$0xff]  }
   0x3   :  { %1652 = vmatpush1.bf16.msra.mxu0 %v4389_v1  ;;  %v4395_v5 = vld [vmem:[%s6414_s1 + $0xf0] ss:$20 sps:$4 sm:$0xff]   ;;  %1692 = vmatprep.subr.bf16.mxu1 %v4390_v2  ;;  %v4399_v8 = vld [vmem:[%s6414_s1 + $0xcc] ss:$20 sps:$4 sm:$0xff]   ;;  %v4401_v9 = vld [vmem:[%s6414_s1 + $0xc8] ss:$20 sps:$4 sm:$0xff]   ;;  %v353_v43 = vunpack.c.0.s8 %v352_v37 }
   0x4   :  { %1693 = vmatpush1.bf16.msra.mxu1 %v4392_v3  ;;  %1653 = vmatprep.subr.bf16.mxu0 %v4393_v4  ;;  %v4398_v7 = vld [vmem:[%s6414_s1 + $0x370] ss:$20 sps:$4 sm:$0xff]   ;;  %v4402_v10 = vld [vmem:[%s6414_s1 + $0x34c] ss:$20 sps:$4 sm:$0xff]   ;;  %v4404_v12 = vld [vmem:[%s6414_s1 + $0x348] ss:$20 sps:$4 sm:$0xff]  }
   0x5   :  { %1694 = vmatprep.subr.bf16.mxu1 %v4396_v6  ;;  %v4405_v11 = vld [vmem:[%s6414_s1 + $0xa4] ss:$20 sps:$4 sm:$0xff]   ;;  %v4407_v14 = vld [vmem:[%s6414_s1 + $0xa0] ss:$20 sps:$4 sm:$0xff]   ;;  %v4411_v15 = vld [vmem:[%s6414_s1 + $0x7c] ss:$20 sps:$4 sm:$0xff]  }
   0x6   :  { %v4408_v13 = vld [vmem:[%s6414_s1 + $0x324] ss:$20 sps:$4 sm:$0xff]   ;;  %v4410_v16 = vld [vmem:[%s6414_s1 + $0x320] ss:$20 sps:$4 sm:$0xff]   ;;  %v4414_v17 = vld [vmem:[%s6414_s1 + $0x2fc] ss:$20 sps:$4 sm:$0xff]  }
   0x7   :  { %1654 = vmatpush1.bf16.msra.mxu0 %v4395_v5  ;;  %v4413_v18 = vld [vmem:[%s6414_s1 + $0x78] ss:$20 sps:$4 sm:$0xff]   ;;  %v4417_v19 = vld [vmem:[%s6414_s1 + $0x54] ss:$20 sps:$4 sm:$0xff]   ;;  %v4419_v22 = vld [vmem:[%s6414_s1 + $0x50] ss:$20 sps:$4 sm:$0xff]  }
   0x8   :  { %1655 = vmatprep.subr.bf16.mxu0 %v4399_v8  ;;  %1695 = vmatpush1.bf16.msra.mxu1 %v4398_v7  ;;  %v4416_v20 = vld [vmem:[%s6414_s1 + $0x2f8] ss:$20 sps:$4 sm:$0xff]   ;;  %v4420_v21 = vld [vmem:[%s6414_s1 + $0x2d4] ss:$20 sps:$4 sm:$0xff]   ;;  %v4422_v24 = vld [vmem:[%s6414_s1 + $0x2d0] ss:$20 sps:$4 sm:$0xff]  }
   0x9   :  { %1696 = vmatprep.subr.bf16.mxu1 %v4402_v10  ;;  %v4423_v23 = vld [vmem:[%s6414_s1 + $0x2c] ss:$20 sps:$4 sm:$0xff]   ;;  %v4425_v26 = vld [vmem:[%s6414_s1 + $0x28] ss:$20 sps:$4 sm:$0xff]   ;;  %v4429_v27 = vld [vmem:[%s6414_s1 + $0x4] ss:$20 sps:$4 sm:$0xff]  }
   0xa   :  { %v4426_v25 = vld [vmem:[%s6414_s1 + $0x2ac] ss:$20 sps:$4 sm:$0xff]   ;;  %v4428_v28 = vld [vmem:[%s6414_s1 + $0x2a8] ss:$20 sps:$4 sm:$0xff]   ;;  %v4432_v29 = vld [vmem:[%s6414_s1 + $0x284] ss:$20 sps:$4 sm:$0xff]  }
   0xb   :  { %1656 = vmatpush1.bf16.msra.mxu0 %v4401_v9  ;;  %v4431_v30 = vld [vmem:[%s6414_s1] ss:$20 sps:$4 sm:$0xff]   ;;  %v4435_v31 = vld [vmem:[%s6414_s1 + $0x25c] ss:$20 sps:$4 sm:$0xff]   ;;  %v4437_v34 = vld [vmem:[%s6414_s1 + $0x258] ss:$20 sps:$4 sm:$0xff]  }
   0xc   :  { %1657 = vmatprep.subr.bf16.mxu0 %v4405_v11  ;;  %1697 = vmatpush1.bf16.msra.mxu1 %v4404_v12  ;;  %v4434_v32 = vld [vmem:[%s6414_s1 + $0x280] ss:$20 sps:$4 sm:$0xff]   ;;  %v4438_v33 = vld [vmem:[%s6414_s1 + $0x4dc] ss:$20 sps:$4 sm:$0xff]   ;;  %v4440_v39 = vld [vmem:[%s6414_s1 + $0x4d8] ss:$20 sps:$4 sm:$0xff]  }
   0xd   :  { %1698 = vmatprep.subr.bf16.mxu1 %v4408_v13  ;;  %v4441_v38 = vld [vmem:[%s6414_s1 + $0x234] ss:$20 sps:$4 sm:$0xff]   ;;  %v4443_v41 = vld [vmem:[%s6414_s1 + $0x230] ss:$20 sps:$4 sm:$0xff]   ;;  %v5145_v42 = vshrl.u32 %v324_v35, 7  ;;  %vm2582_vm2 = vcmask 1043456  }
   0xe   :  { %v4444_v40 = vld [vmem:[%s6414_s1 + $0x4b4] ss:$20 sps:$4 sm:$0xff]   ;;  %v4447_v44 = vld [vmem:[%s6414_s1 + $0x20c] ss:$20 sps:$4 sm:$0xff]   ;;  %v4446_v45 = vld [vmem:[%s6414_s1 + $0x4b0] ss:$20 sps:$4 sm:$0xff]  }
   0xf   :  { %1658 = vmatpush1.bf16.msra.mxu0 %v4407_v14  ;;  %v4450_v46 = vld [vmem:[%s6414_s1 + $0x48c] ss:$20 sps:$4 sm:$0xff]   ;;  %v4449_v47 = vld [vmem:[%s6414_s1 + $0x208] ss:$20 sps:$4 sm:$0xff]   ;;  %v356_v48 = vsub.s32 %v353_v43, %v5145_v42  ;;  %v4453_v49 = vld [vmem:[%s6414_s1 + $0x1e4] ss:$20 sps:$4 sm:$0xff]  }
  0x10   :  { %1659 = vmatprep.subr.bf16.mxu0 %v4411_v15  ;;  %1699 = vmatpush1.bf16.msra.mxu1 %v4410_v16  ;;  %v4452_v50 = vld [vmem:[%s6414_s1 + $0x488] ss:$20 sps:$4 sm:$0xff]   ;;  %v4456_v51 = vld [vmem:[%s6414_s1 + $0x464] ss:$20 sps:$4 sm:$0xff]   ;;  %v4455_v53 = vld [vmem:[%s6414_s1 + $0x1e0] ss:$20 sps:$4 sm:$0xff]  }
  0x11   :  { %1700 = vmatprep.subr.bf16.mxu1 %v4414_v17  ;;  %v33_v52 = vld [vmem:[%s6415_s0] sm:$0x3f]  ;;  %v4459_v56 = vld [vmem:[%s6414_s1 + $0x1bc] ss:$20 sps:$4 sm:$0xff]   ;;  %v4461_v61 = vld [vmem:[%s6414_s1 + $0x1b8] ss:$20 sps:$4 sm:$0xff]  }
  0x12   :  { %v357_v54 = vrot.slane %v33_v52, %v356_v48  ;;  %v350_v55 = vcombine.high %v33_v52, %v33_v52  ;;  %v4458_v57 = vld [vmem:[%s6414_s1 + $0x460] ss:$20 sps:$4 sm:$0xff]   ;;  %v4462_v60 = vld [vmem:[%s6414_s1 + $0x43c] ss:$20 sps:$4 sm:$0xff]   ;;  %v4464_v1 = vld [vmem:[%s6414_s1 + $0x438] ss:$20 sps:$4 sm:$0xff]  }
  0x13   :  { %1660 = vmatpush1.bf16.msra.mxu0 %v4413_v18  ;;  %v4465_v0 = vld [vmem:[%s6414_s1 + $0x194] ss:$20 sps:$4 sm:$0xff]   ;;  %v4467_v4 = vld [vmem:[%s6414_s1 + $0x190] ss:$20 sps:$4 sm:$0xff]   ;;  %v4471_v5 = vld [vmem:[%s6414_s1 + $0x16c] ss:$20 sps:$4 sm:$0xff]  }
  0x14   :  { %1661 = vmatprep.subr.bf16.mxu0 %v4417_v19  ;;  %1701 = vmatpush1.bf16.msra.mxu1 %v4416_v20  ;;  %v365_v58 = vcombine.high %v357_v54, %v357_v54  ;;  %v364_v59 = vrot.slane %v350_v55, %v356_v48  ;;  %v4468_v3 = vld [vmem:[%s6414_s1 + $0x414] ss:$20 sps:$4 sm:$0xff]   ;;  %v4470_v6 = vld [vmem:[%s6414_s1 + $0x410] ss:$20 sps:$4 sm:$0xff]   ;;  %v4474_v7 = vld [vmem:[%s6414_s1 + $0x3ec] ss:$20 sps:$4 sm:$0xff]   ;;  %v5233_v14 = vrot.slane %v357_v54, %v356_v48 }
  0x15   :  { %1702 = vmatprep.subr.bf16.mxu1 %v4420_v21  ;;  %v4473_v8 = vld [vmem:[%s6414_s1 + $0x168] ss:$20 sps:$4 sm:$0xff]   ;;  %v4477_v9 = vld [vmem:[%s6414_s1 + $0x144] ss:$20 sps:$4 sm:$0xff]   ;;  %v4479_v12 = vld [vmem:[%s6414_s1 + $0x140] ss:$20 sps:$4 sm:$0xff]  }
  0x16   :  { %v5187_v62 = vrot.slane %v365_v58, %v356_v48  ;;  %v5189_v63 = vrot.slane %v364_v59, %v356_v48  ;;  %v4476_v10 = vld [vmem:[%s6414_s1 + $0x3e8] ss:$20 sps:$4 sm:$0xff]   ;;  %v4480_v11 = vld [vmem:[%s6414_s1 + $0x3c4] ss:$20 sps:$4 sm:$0xff]   ;;  %v366_v13 = vcombine.high %v364_v59, %v364_v59  ;;  %v4482_v16 = vld [vmem:[%s6414_s1 + $0x3c0] ss:$20 sps:$4 sm:$0xff]   ;;  %v5251_v20 = vcombine.high %v5233_v14, %v5233_v14 }
  0x17   :  { %1662 = vmatpush1.bf16.msra.mxu0 %v4419_v22  ;;  %v4485_v15 = vld [vmem:[%s6414_s1 + $0x61c] ss:$20 sps:$4 sm:$0xff]   ;;  %v4488_v17 = vld [vmem:[%s6414_s1 + $0x124] ss:$20 sps:$4 sm:$0xff]   ;;  %v4491_v21 = vld [vmem:[%s6414_s1 + $0x5f4] ss:$20 sps:$4 sm:$0xff]  }
  0x18   :  { %1663 = vmatprep.subr.bf16.mxu0 %v4423_v23  ;;  %1703 = vmatpush1.bf16.msra.mxu1 %v4422_v24  ;;  %v5200_v2 = vcombine.high %v5187_v62, %v5187_v62  ;;  %v4483_v18 = vld [vmem:[%s6414_s1 + $0x618] ss:$20 sps:$4 sm:$0xff]   ;;  %v5247_v19 = vrot.slane %v366_v13, %v356_v48  ;;  %v4486_v22 = vld [vmem:[%s6414_s1 + $0x120] ss:$20 sps:$4 sm:$0xff]   ;;  %v4494_v23 = vld [vmem:[%s6414_s1 + $0xfc] ss:$20 sps:$4 sm:$0xff]  }
  0x19   :  { %1704 = vmatprep.subr.bf16.mxu1 %v4426_v25  ;;  %1683 = vmatprep.mubr.bf16.mxu0 %v5187_v62  ;;  %v4489_v24 = vld [vmem:[%s6414_s1 + $0x5f0] ss:$20 sps:$4 sm:$0xff]   ;;  %v4497_v25 = vld [vmem:[%s6414_s1 + $0x5cc] ss:$20 sps:$4 sm:$0xff]   ;;  %v4515_v37 = vld [vmem:[%s6414_s1 + $0x554] ss:$20 sps:$4 sm:$0xff]  }
  0x1a   :  { %1724 = vmatprep.mubr.bf16.mxu1 %v5200_v2  ;;  %v4512_v35 = vld [vmem:[%s6414_s1 + $0x84] ss:$20 sps:$4 sm:$0xff]   ;;  %v4530_v48 = vld [vmem:[%s6414_s1 + $0xc] ss:$20 sps:$4 sm:$0xff]   ;;  %v4539_v54 = vld [vmem:[%s6414_s1 + $0x734] ss:$20 sps:$4 sm:$0xff]  }
  0x1b   :  { %1664 = vmatpush1.bf16.msra.mxu0 %v4425_v26  ;;  %v4492_v26 = vld [vmem:[%s6414_s1 + $0xf8] ss:$20 sps:$4 sm:$0xff]   ;;  %v4534_v55 = vld [vmem:[%s6414_s1 + $0x260] ss:$20 sps:$4 sm:$0xff]   ;;  %vm2578_vm3 = vcmask 588800   ;;  %vm3512_vm4 = vcmask 130048  }
  0x1c   :  { %1665 = vmatprep.subr.bf16.mxu0 %v4429_v27  ;;  %1705 = vmatpush1.bf16.msra.mxu1 %v4428_v28  ;;  %v4500_v27 = vld [vmem:[%s6414_s1 + $0xd4] ss:$20 sps:$4 sm:$0xff]   ;;  %v4507_v36 = vld [vmem:[%s6414_s1 + $0x578] ss:$20 sps:$4 sm:$0xff]   ;;  %vm3797_vm5 = vcmask 615424  }
  0x1d   :  { %1706 = vmatprep.subr.bf16.mxu1 %v4432_v29  ;;  %v4495_v28 = vld [vmem:[%s6414_s1 + $0x5c8] ss:$20 sps:$4 sm:$0xff]   ;;  %v4503_v29 = vld [vmem:[%s6414_s1 + $0x5a4] ss:$20 sps:$4 sm:$0xff]   ;;  %v4545_v58 = vld [vmem:[%s6414_s1 + $0x70c] ss:$20 sps:$4 sm:$0xff]  }
  0x1e   :  { %v4516_v43 = vld [vmem:[%s6414_s1 + $0x58] ss:$20 sps:$4 sm:$0xff]  }
  0x1f   :  { %1666 = vmatpush1.bf16.msra.mxu0 %v4431_v30  ;;  %v4498_v30 = vld [vmem:[%s6414_s1 + $0xd0] ss:$20 sps:$4 sm:$0xff]   ;;  %v4540_v59 = vld [vmem:[%s6414_s1 + $0x238] ss:$20 sps:$4 sm:$0xff]  }
  0x20   :  { %1667 = vmatprep.subr.bf16.mxu0 %v4435_v31  ;;  %1707 = vmatpush1.bf16.msra.mxu1 %v4434_v32  ;;  %v4506_v31 = vld [vmem:[%s6414_s1 + $0xac] ss:$20 sps:$4 sm:$0xff]   ;;  %v4536_v52 = vld [vmem:[%s6414_s1 + $0x264] ss:$20 sps:$4 sm:$0xff]  }
  0x21   :  { %1708 = vmatprep.subr.bf16.mxu1 %v4438_v33  ;;  %v4501_v32 = vld [vmem:[%s6414_s1 + $0x5a0] ss:$20 sps:$4 sm:$0xff]   ;;  %v4509_v33 = vld [vmem:[%s6414_s1 + $0x57c] ss:$20 sps:$4 sm:$0xff]  }
  0x22   :  { %v4569_v13 = vld [vmem:[%s6414_s1 + $0x66c] ss:$20 sps:$4 sm:$0xff]  }
  0x23   :  { %1668 = vmatpush2.bf16.msra.mxu0 %v4437_v34  ;;  %v4504_v34 = vld [vmem:[%s6414_s1 + $0xa8] ss:$20 sps:$4 sm:$0xff]  }
  0x24   :  { %1669 = vmatprep.subr.bf16.mxu0 %v4441_v38  ;;  %1709 = vmatpush2.bf16.msra.mxu1 %v4440_v39  ;;  %v4510_v38 = vld [vmem:[%s6414_s1 + $0x80] ss:$20 sps:$4 sm:$0xff]   ;;  %v4518_v39 = vld [vmem:[%s6414_s1 + $0x5c] ss:$20 sps:$4 sm:$0xff]  }
  0x25   :  { %1710 = vmatprep.subr.bf16.mxu1 %v4444_v40  ;;  %v4513_v40 = vld [vmem:[%s6414_s1 + $0x550] ss:$20 sps:$4 sm:$0xff]  }
  0x27   :  { %1670 = vmatpush2.bf16.msra.mxu0 %v4443_v41  ;;  %v4521_v41 = vld [vmem:[%s6414_s1 + $0x52c] ss:$20 sps:$4 sm:$0xff]  }
  0x28   :  { %1671 = vmatprep.subr.bf16.mxu0 %v4447_v44  ;;  %1711 = vmatpush2.bf16.msra.mxu1 %v4446_v45  ;;  %v4524_v44 = vld [vmem:[%s6414_s1 + $0x34] ss:$20 sps:$4 sm:$0xff]  }
  0x29   :  { %1712 = vmatprep.subr.bf16.mxu1 %v4450_v46  ;;  %v4519_v45 = vld [vmem:[%s6414_s1 + $0x528] ss:$20 sps:$4 sm:$0xff]   ;;  %v4527_v46 = vld [vmem:[%s6414_s1 + $0x504] ss:$20 sps:$4 sm:$0xff]  }
  0x2b   :  { %1672 = vmatpush2.bf16.msra.mxu0 %v4449_v47  ;;  %v4522_v47 = vld [vmem:[%s6414_s1 + $0x30] ss:$20 sps:$4 sm:$0xff]  }
  0x2c   :  { %1673 = vmatprep.subr.bf16.mxu0 %v4453_v49  ;;  %1713 = vmatpush2.bf16.msra.mxu1 %v4452_v50  ;;  %v4525_v49 = vld [vmem:[%s6414_s1 + $0x500] ss:$20 sps:$4 sm:$0xff]   ;;  %v4533_v50 = vld [vmem:[%s6414_s1 + $0x75c] ss:$20 sps:$4 sm:$0xff]  }
  0x2d   :  { %1714 = vmatprep.subr.bf16.mxu1 %v4456_v51  ;;  %v4528_v51 = vld [vmem:[%s6414_s1 + $0x8] ss:$20 sps:$4 sm:$0xff]  }
  0x2f   :  { %1674 = vmatpush2.bf16.msra.mxu0 %v4455_v53  ;;  %v4531_v53 = vld [vmem:[%s6414_s1 + $0x758] ss:$20 sps:$4 sm:$0xff]  }
  0x30   :  { %1675 = vmatprep.subr.bf16.mxu0 %v4459_v56  ;;  %1715 = vmatpush2.bf16.msra.mxu1 %v4458_v57  ;;  %v4542_v56 = vld [vmem:[%s6414_s1 + $0x23c] ss:$20 sps:$4 sm:$0xff]  }
  0x31   :  { %1716 = vmatprep.subr.bf16.mxu1 %v4462_v60  ;;  %v4537_v57 = vld [vmem:[%s6414_s1 + $0x730] ss:$20 sps:$4 sm:$0xff]   ;;  %v4548_v60 = vld [vmem:[%s6414_s1 + $0x214] ss:$20 sps:$4 sm:$0xff]  }
  0x33   :  { %1676 = vmatpush2.bf16.msra.mxu0 %v4461_v61  ;;  %v4543_v61 = vld [vmem:[%s6414_s1 + $0x708] ss:$20 sps:$4 sm:$0xff]  }
  0x34   :  { %1677 = vmatprep.subr.bf16.mxu0 %v4465_v0  ;;  %1717 = vmatpush2.bf16.msra.mxu1 %v4464_v1  ;;  %v4551_v0 = vld [vmem:[%s6414_s1 + $0x6e4] ss:$20 sps:$4 sm:$0xff]  }
  0x35   :  { %1718 = vmatprep.subr.bf16.mxu1 %v4468_v3  ;;  %v4546_v1 = vld [vmem:[%s6414_s1 + $0x210] ss:$20 sps:$4 sm:$0xff]   ;;  %v4554_v3 = vld [vmem:[%s6414_s1 + $0x1ec] ss:$20 sps:$4 sm:$0xff]  }
  0x37   :  { %1678 = vmatpush2.bf16.msra.mxu0 %v4467_v4  ;;  %v4549_v4 = vld [vmem:[%s6414_s1 + $0x6e0] ss:$20 sps:$4 sm:$0xff]  }
  0x38   :  { %1679 = vmatprep.subr.bf16.mxu0 %v4471_v5  ;;  %1719 = vmatpush2.bf16.msra.mxu1 %v4470_v6  ;;  %v4557_v5 = vld [vmem:[%s6414_s1 + $0x6bc] ss:$20 sps:$4 sm:$0xff]  }
  0x39   :  { %1720 = vmatprep.subr.bf16.mxu1 %v4474_v7  ;;  %v4552_v6 = vld [vmem:[%s6414_s1 + $0x1e8] ss:$20 sps:$4 sm:$0xff]   ;;  %v4560_v7 = vld [vmem:[%s6414_s1 + $0x1c4] ss:$20 sps:$4 sm:$0xff]  }
  0x3b   :  { %1680 = vmatpush2.bf16.msra.mxu0 %v4473_v8  ;;  %v4555_v8 = vld [vmem:[%s6414_s1 + $0x6b8] ss:$20 sps:$4 sm:$0xff]  }
  0x3c   :  { %1681 = vmatprep.subr.bf16.mxu0 %v4477_v9  ;;  %1721 = vmatpush2.bf16.msra.mxu1 %v4476_v10  ;;  %v4563_v9 = vld [vmem:[%s6414_s1 + $0x694] ss:$20 sps:$4 sm:$0xff]  }
  0x3d   :  { %1722 = vmatprep.subr.bf16.mxu1 %v4480_v11  ;;  %v4558_v10 = vld [vmem:[%s6414_s1 + $0x1c0] ss:$20 sps:$4 sm:$0xff]   ;;  %v4566_v11 = vld [vmem:[%s6414_s1 + $0x19c] ss:$20 sps:$4 sm:$0xff]  }
  0x3f   :  { %1682 = vmatpush2.bf16.msra.mxu0 %v4479_v12  ;;  %v4561_v12 = vld [vmem:[%s6414_s1 + $0x690] ss:$20 sps:$4 sm:$0xff]  }
  0x40   :  { %1733 = vmatprep.subr.bf16.mxu0 %v4485_v15  ;;  %1723 = vmatpush2.bf16.msra.mxu1 %v4482_v16  ;;  %v4564_v15 = vld [vmem:[%s6414_s1 + $0x198] ss:$20 sps:$4 sm:$0xff]   ;;  %v4572_v16 = vld [vmem:[%s6414_s1 + $0x174] ss:$20 sps:$4 sm:$0xff]  }
  0x41   :  { %1774 = vmatprep.subr.bf16.mxu1 %v4488_v17  ;;  %v4567_v17 = vld [vmem:[%s6414_s1 + $0x668] ss:$20 sps:$4 sm:$0xff]  }
  0x42   :  { %1684 = vmatmul.mubr.bf16.vlgmr.msra.gmra.mxu0 %v5233_v14 }
  0x43   :  { %1734 = vmatpush1.bf16.msra.mxu0 %v4483_v18  ;;  %1765 = vmatprep.mubr.bf16.mxu0 %v5247_v19  ;;  %v4575_v18 = vld [vmem:[%s6414_s1 + $0x644] ss:$20 sps:$4 sm:$0xff]  }
  0x44   :  { %1725 = vmatmul.mubr.bf16.vlgmr.msra.gmra.mxu1 %v5251_v20  ;;  %1735 = vmatprep.subr.bf16.mxu0 %v4491_v21  ;;  %v4570_v21 = vld [vmem:[%s6414_s1 + $0x170] ss:$20 sps:$4 sm:$0xff]  }
  0x45   :  { %1775 = vmatpush1.bf16.msra.mxu1 %v4486_v22  ;;  %1806 = vmatprep.mubr.bf16.mxu1 %v5187_v62  ;;  %v4578_v22 = vld [vmem:[%s6414_s1 + $0x14c] ss:$20 sps:$4 sm:$0xff]  }
  0x46   :  { %1776 = vmatprep.subr.bf16.mxu1 %v4494_v23  ;;  %v4573_v23 = vld [vmem:[%s6414_s1 + $0x640] ss:$20 sps:$4 sm:$0xff]  }
  0x47   :  { %1736 = vmatpush1.bf16.msra.mxu0 %v4489_v24  ;;  %v4582_v24 = vld [vmem:[%s6414_s1 + $0x3a4] ss:$20 sps:$4 sm:$0xff]  }
  0x48   :  { %1737 = vmatprep.subr.bf16.mxu0 %v4497_v25  ;;  %v4576_v25 = vld [vmem:[%s6414_s1 + $0x148] ss:$20 sps:$4 sm:$0xff]  }
  0x49   :  { %1777 = vmatpush1.bf16.msra.mxu1 %v4492_v26  ;;  %v4585_v26 = vld [vmem:[%s6414_s1 + $0x624] ss:$20 sps:$4 sm:$0xff]  }
  0x4a   :  { %1778 = vmatprep.subr.bf16.mxu1 %v4500_v27  ;;  %v4580_v27 = vld [vmem:[%s6414_s1 + $0x3a0] ss:$20 sps:$4 sm:$0xff]  }
  0x4b   :  { %1738 = vmatpush1.bf16.msra.mxu0 %v4495_v28  ;;  %v4588_v28 = vld [vmem:[%s6414_s1 + $0x37c] ss:$20 sps:$4 sm:$0xff]  }
  0x4c   :  { %1739 = vmatprep.subr.bf16.mxu0 %v4503_v29  ;;  %v4583_v29 = vld [vmem:[%s6414_s1 + $0x620] ss:$20 sps:$4 sm:$0xff]  }
  0x4d   :  { %1779 = vmatpush1.bf16.msra.mxu1 %v4498_v30  ;;  %v4591_v30 = vld [vmem:[%s6414_s1 + $0x5fc] ss:$20 sps:$4 sm:$0xff]  }
  0x4e   :  { %1780 = vmatprep.subr.bf16.mxu1 %v4506_v31  ;;  %v4586_v31 = vld [vmem:[%s6414_s1 + $0x378] ss:$20 sps:$4 sm:$0xff]  }
  0x4f   :  { %1740 = vmatpush1.bf16.msra.mxu0 %v4501_v32  ;;  %v4594_v32 = vld [vmem:[%s6414_s1 + $0x354] ss:$20 sps:$4 sm:$0xff]  }
  0x50   :  { %1741 = vmatprep.subr.bf16.mxu0 %v4509_v33  ;;  %v4589_v33 = vld [vmem:[%s6414_s1 + $0x5f8] ss:$20 sps:$4 sm:$0xff]  }
  0x51   :  { %1781 = vmatpush1.bf16.msra.mxu1 %v4504_v34  ;;  %v4597_v34 = vld [vmem:[%s6414_s1 + $0x5d4] ss:$20 sps:$4 sm:$0xff]  }
  0x52   :  { %1782 = vmatprep.subr.bf16.mxu1 %v4512_v35  ;;  %v4592_v35 = vld [vmem:[%s6414_s1 + $0x350] ss:$20 sps:$4 sm:$0xff]  }
  0x53   :  { %1742 = vmatpush1.bf16.msra.mxu0 %v4507_v36  ;;  %v4600_v36 = vld [vmem:[%s6414_s1 + $0x32c] ss:$20 sps:$4 sm:$0xff]  }
  0x54   :  { %1743 = vmatprep.subr.bf16.mxu0 %v4515_v37  ;;  %v4595_v37 = vld [vmem:[%s6414_s1 + $0x5d0] ss:$20 sps:$4 sm:$0xff]  }
  0x55   :  { %1783 = vmatpush1.bf16.msra.mxu1 %v4510_v38  ;;  %v4603_v38 = vld [vmem:[%s6414_s1 + $0x5ac] ss:$20 sps:$4 sm:$0xff]  }
  0x56   :  { %1784 = vmatprep.subr.bf16.mxu1 %v4518_v39  ;;  %v4598_v39 = vld [vmem:[%s6414_s1 + $0x328] ss:$20 sps:$4 sm:$0xff]  }
  0x57   :  { %1744 = vmatpush1.bf16.msra.mxu0 %v4513_v40  ;;  %v4606_v40 = vld [vmem:[%s6414_s1 + $0x304] ss:$20 sps:$4 sm:$0xff]  }
  0x58   :  { %1745 = vmatprep.subr.bf16.mxu0 %v4521_v41  ;;  %v4601_v41 = vld [vmem:[%s6414_s1 + $0x5a8] ss:$20 sps:$4 sm:$0xff]  }
  0x59   :  { %1785 = vmatpush1.bf16.msra.mxu1 %v4516_v43  ;;  %v4609_v43 = vld [vmem:[%s6414_s1 + $0x584] ss:$20 sps:$4 sm:$0xff]  }
  0x5a   :  { %1786 = vmatprep.subr.bf16.mxu1 %v4524_v44  ;;  %v4604_v44 = vld [vmem:[%s6414_s1 + $0x300] ss:$20 sps:$4 sm:$0xff]  }
  0x5b   :  { %1746 = vmatpush1.bf16.msra.mxu0 %v4519_v45  ;;  %v4612_v45 = vld [vmem:[%s6414_s1 + $0x2dc] ss:$20 sps:$4 sm:$0xff]  }
  0x5c   :  { %1747 = vmatprep.subr.bf16.mxu0 %v4527_v46  ;;  %v4607_v46 = vld [vmem:[%s6414_s1 + $0x580] ss:$20 sps:$4 sm:$0xff]  }
  0x5d   :  { %1787 = vmatpush1.bf16.msra.mxu1 %v4522_v47  ;;  %v4615_v47 = vld [vmem:[%s6414_s1 + $0x55c] ss:$20 sps:$4 sm:$0xff]  }
  0x5e   :  { %1788 = vmatprep.subr.bf16.mxu1 %v4530_v48  ;;  %v4610_v48 = vld [vmem:[%s6414_s1 + $0x2d8] ss:$20 sps:$4 sm:$0xff]  }
  0x5f   :  { %1748 = vmatpush1.bf16.msra.mxu0 %v4525_v49  ;;  %v4618_v49 = vld [vmem:[%s6414_s1 + $0x2b4] ss:$20 sps:$4 sm:$0xff]  }
  0x60   :  { %1749 = vmatprep.subr.bf16.mxu0 %v4533_v50  ;;  %v4613_v50 = vld [vmem:[%s6414_s1 + $0x558] ss:$20 sps:$4 sm:$0xff]  }
  0x61   :  { %1789 = vmatpush1.bf16.msra.mxu1 %v4528_v51  ;;  %v4621_v51 = vld [vmem:[%s6414_s1 + $0x534] ss:$20 sps:$4 sm:$0xff]  }
  0x62   :  { %1790 = vmatprep.subr.bf16.mxu1 %v4536_v52  ;;  %v4616_v52 = vld [vmem:[%s6414_s1 + $0x2b0] ss:$20 sps:$4 sm:$0xff]  }
  0x63   :  { %1750 = vmatpush2.bf16.msra.mxu0 %v4531_v53  ;;  %v4624_v53 = vld [vmem:[%s6414_s1 + $0x28c] ss:$20 sps:$4 sm:$0xff]  }
  0x64   :  { %1751 = vmatprep.subr.bf16.mxu0 %v4539_v54  ;;  %v4619_v54 = vld [vmem:[%s6414_s1 + $0x530] ss:$20 sps:$4 sm:$0xff]  }
  0x65   :  { %1791 = vmatpush2.bf16.msra.mxu1 %v4534_v55  ;;  %v4627_v55 = vld [vmem:[%s6414_s1 + $0x50c] ss:$20 sps:$4 sm:$0xff]  }
  0x66   :  { %1792 = vmatprep.subr.bf16.mxu1 %v4542_v56  ;;  %v4622_v56 = vld [vmem:[%s6414_s1 + $0x288] ss:$20 sps:$4 sm:$0xff]  }
  0x67   :  { %1752 = vmatpush2.bf16.msra.mxu0 %v4537_v57  ;;  %v4630_v57 = vld [vmem:[%s6414_s1 + $0x4e4] ss:$20 sps:$4 sm:$0xff]  }
  0x68   :  { %1753 = vmatprep.subr.bf16.mxu0 %v4545_v58  ;;  %v4625_v58 = vld [vmem:[%s6414_s1 + $0x508] ss:$20 sps:$4 sm:$0xff]  }
  0x69   :  { %1793 = vmatpush2.bf16.msra.mxu1 %v4540_v59  ;;  %v4633_v59 = vld [vmem:[%s6414_s1 + $0x764] ss:$20 sps:$4 sm:$0xff]  }
  0x6a   :  { %1794 = vmatprep.subr.bf16.mxu1 %v4548_v60  ;;  %v4628_v60 = vld [vmem:[%s6414_s1 + $0x4e0] ss:$20 sps:$4 sm:$0xff]  }
  0x6b   :  { %1754 = vmatpush2.bf16.msra.mxu0 %v4543_v61  ;;  %v4636_v61 = vld [vmem:[%s6414_s1 + $0x4bc] ss:$20 sps:$4 sm:$0xff]  }
  0x6c   :  { %1755 = vmatprep.subr.bf16.mxu0 %v4551_v0  ;;  %v4631_v0 = vld [vmem:[%s6414_s1 + $0x760] ss:$20 sps:$4 sm:$0xff]  }
  0x6d   :  { %1795 = vmatpush2.bf16.msra.mxu1 %v4546_v1  ;;  %v4639_v1 = vld [vmem:[%s6414_s1 + $0x73c] ss:$20 sps:$4 sm:$0xff]  }
  0x6e   :  { %1796 = vmatprep.subr.bf16.mxu1 %v4554_v3  ;;  %v4634_v3 = vld [vmem:[%s6414_s1 + $0x4b8] ss:$20 sps:$4 sm:$0xff]  }
  0x6f   :  { %1756 = vmatpush2.bf16.msra.mxu0 %v4549_v4  ;;  %v4642_v4 = vld [vmem:[%s6414_s1 + $0x494] ss:$20 sps:$4 sm:$0xff]  }
  0x70   :  { %1757 = vmatprep.subr.bf16.mxu0 %v4557_v5  ;;  %v4637_v5 = vld [vmem:[%s6414_s1 + $0x738] ss:$20 sps:$4 sm:$0xff]  }
  0x71   :  { %1797 = vmatpush2.bf16.msra.mxu1 %v4552_v6  ;;  %v4645_v6 = vld [vmem:[%s6414_s1 + $0x714] ss:$20 sps:$4 sm:$0xff]  }
  0x72   :  { %1798 = vmatprep.subr.bf16.mxu1 %v4560_v7  ;;  %v4640_v7 = vld [vmem:[%s6414_s1 + $0x490] ss:$20 sps:$4 sm:$0xff]  }
  0x73   :  { %1758 = vmatpush2.bf16.msra.mxu0 %v4555_v8  ;;  %v4648_v8 = vld [vmem:[%s6414_s1 + $0x46c] ss:$20 sps:$4 sm:$0xff]  }
  0x74   :  { %1759 = vmatprep.subr.bf16.mxu0 %v4563_v9  ;;  %v4643_v9 = vld [vmem:[%s6414_s1 + $0x710] ss:$20 sps:$4 sm:$0xff]  }
  0x75   :  { %1799 = vmatpush2.bf16.msra.mxu1 %v4558_v10  ;;  %v4651_v10 = vld [vmem:[%s6414_s1 + $0x6ec] ss:$20 sps:$4 sm:$0xff]  }
  0x76   :  { %1800 = vmatprep.subr.bf16.mxu1 %v4566_v11  ;;  %v4646_v11 = vld [vmem:[%s6414_s1 + $0x468] ss:$20 sps:$4 sm:$0xff]  }
  0x77   :  { %1760 = vmatpush2.bf16.msra.mxu0 %v4561_v12  ;;  %v4654_v12 = vld [vmem:[%s6414_s1 + $0x444] ss:$20 sps:$4 sm:$0xff]  }
  0x78   :  { %1761 = vmatprep.subr.bf16.mxu0 %v4569_v13  ;;  %v4649_v13 = vld [vmem:[%s6414_s1 + $0x6e8] ss:$20 sps:$4 sm:$0xff]  }
  0x79   :  { %1801 = vmatpush2.bf16.msra.mxu1 %v4564_v15  ;;  %v4657_v15 = vld [vmem:[%s6414_s1 + $0x6c4] ss:$20 sps:$4 sm:$0xff]  }
  0x7a   :  { %1802 = vmatprep.subr.bf16.mxu1 %v4572_v16  ;;  %v4652_v16 = vld [vmem:[%s6414_s1 + $0x440] ss:$20 sps:$4 sm:$0xff]  }
  0x7b   :  { %1762 = vmatpush2.bf16.msra.mxu0 %v4567_v17  ;;  %v4655_v17 = vld [vmem:[%s6414_s1 + $0x6c0] ss:$20 sps:$4 sm:$0xff]  }
  0x7c   :  { %1763 = vmatprep.subr.bf16.mxu0 %v4575_v18  ;;  %v4660_v18 = vld [vmem:[%s6414_s1 + $0x41c] ss:$20 sps:$4 sm:$0xff]  }
  0x7d   :  { %1803 = vmatpush2.bf16.msra.mxu1 %v4570_v21  ;;  %v4658_v21 = vld [vmem:[%s6414_s1 + $0x418] ss:$20 sps:$4 sm:$0xff]  }
  0x7e   :  { %1804 = vmatprep.subr.bf16.mxu1 %v4578_v22  ;;  %v4663_v22 = vld [vmem:[%s6414_s1 + $0x69c] ss:$20 sps:$4 sm:$0xff]  }
  0x7f   :  { %1764 = vmatpush2.bf16.msra.mxu0 %v4573_v23  ;;  %v4661_v23 = vld [vmem:[%s6414_s1 + $0x698] ss:$20 sps:$4 sm:$0xff]  }
  0x80   :  { %1815 = vmatprep.subr.bf16.mxu0 %v4582_v24  ;;  %v4666_v24 = vld [vmem:[%s6414_s1 + $0x3f4] ss:$20 sps:$4 sm:$0xff]  }
  0x81   :  { %1805 = vmatpush2.bf16.msra.mxu1 %v4576_v25  ;;  %v4664_v25 = vld [vmem:[%s6414_s1 + $0x3f0] ss:$20 sps:$4 sm:$0xff]  }
  0x82   :  { %1766 = vmatmul.mubr.bf16.vlgmr.msra.gmra.mxu0 %v5189_v63  ;;  %1856 = vmatprep.subr.bf16.mxu1 %v4585_v26  ;;  %v4669_v26 = vld [vmem:[%s6414_s1 + $0x674] ss:$20 sps:$4 sm:$0xff]  }
  0x83   :  { %1816 = vmatpush1.bf16.msra.mxu0 %v4580_v27  ;;  %1847 = vmatprep.mubr.bf16.mxu0 %v5200_v2  ;;  %v4667_v27 = vld [vmem:[%s6414_s1 + $0x670] ss:$20 sps:$4 sm:$0xff]  }
  0x84   :  { %1807 = vmatmul.mubr.bf16.vlgmr.msra.gmra.mxu1 %v5233_v14  ;;  %1817 = vmatprep.subr.bf16.mxu0 %v4588_v28  ;;  %v4672_v28 = vld [vmem:[%s6414_s1 + $0x3cc] ss:$20 sps:$4 sm:$0xff]  }
  0x85   :  { %1857 = vmatpush1.bf16.msra.mxu1 %v4583_v29  ;;  %1888 = vmatprep.mubr.bf16.mxu1 %v5247_v19  ;;  %v4670_v29 = vld [vmem:[%s6414_s1 + $0x3c8] ss:$20 sps:$4 sm:$0xff]  }
  0x86   :  { %1858 = vmatprep.subr.bf16.mxu1 %v4591_v30  ;;  %v4675_v30 = vld [vmem:[%s6414_s1 + $0x64c] ss:$20 sps:$4 sm:$0xff]  }
  0x87   :  { %1818 = vmatpush1.bf16.msra.mxu0 %v4586_v31  ;;  %v4673_v31 = vld [vmem:[%s6414_s1 + $0x648] ss:$20 sps:$4 sm:$0xff]  }
  0x88   :  { %1819 = vmatprep.subr.bf16.mxu0 %v4594_v32  ;;  %v4676_v32 = vld [vmem:[%s6414_s1 + $0x268] ss:$20 sps:$4 sm:$0xff]  }
  0x89   :  { %1859 = vmatpush1.bf16.msra.mxu1 %v4589_v33  ;;  %v4678_v33 = vld [vmem:[%s6414_s1 + $0x4e8] ss:$20 sps:$4 sm:$0xff]  }
  0x8a   :  { %1860 = vmatprep.subr.bf16.mxu1 %v4597_v34  ;;  %v4677_v34 = vld [vmem:[%s6414_s1 + $0x128] ss:$20 sps:$4 sm:$0xff]  }
  0x8b   :  { %1820 = vmatpush1.bf16.msra.mxu0 %v4592_v35  ;;  %v4680_v35 = vld [vmem:[%s6414_s1 + $0x240] ss:$20 sps:$4 sm:$0xff]  }
  0x8c   :  { %1821 = vmatprep.subr.bf16.mxu0 %v4600_v36  ;;  %v4679_v36 = vld [vmem:[%s6414_s1 + $0x3a8] ss:$20 sps:$4 sm:$0xff]  }
  0x8d   :  { %1861 = vmatpush1.bf16.msra.mxu1 %v4595_v37  ;;  %v4681_v37 = vld [vmem:[%s6414_s1 + $0x100] ss:$20 sps:$4 sm:$0xff]  }
  0x8e   :  { %1862 = vmatprep.subr.bf16.mxu1 %v4603_v38  ;;  %v4682_v38 = vld [vmem:[%s6414_s1 + $0x4c0] ss:$20 sps:$4 sm:$0xff]  }
  0x8f   :  { %1822 = vmatpush1.bf16.msra.mxu0 %v4598_v39  ;;  %v4683_v39 = vld [vmem:[%s6414_s1 + $0x380] ss:$20 sps:$4 sm:$0xff]  }
  0x90   :  { %1823 = vmatprep.subr.bf16.mxu0 %v4606_v40  ;;  %v4684_v40 = vld [vmem:[%s6414_s1 + $0x218] ss:$20 sps:$4 sm:$0xff]  }
  0x91   :  { %1863 = vmatpush1.bf16.msra.mxu1 %v4601_v41  ;;  %v4685_v41 = vld [vmem:[%s6414_s1 + $0xd8] ss:$20 sps:$4 sm:$0xff]  }
  0x92   :  { %1864 = vmatprep.subr.bf16.mxu1 %v4609_v43  ;;  %v4686_v43 = vld [vmem:[%s6414_s1 + $0x498] ss:$20 sps:$4 sm:$0xff]  }
  0x93   :  { %1824 = vmatpush1.bf16.msra.mxu0 %v4604_v44  ;;  %v4688_v44 = vld [vmem:[%s6414_s1 + $0x1f0] ss:$20 sps:$4 sm:$0xff]  }
  0x94   :  { %1825 = vmatprep.subr.bf16.mxu0 %v4612_v45  ;;  %v4690_v45 = vld [vmem:[%s6414_s1 + $0x470] ss:$20 sps:$4 sm:$0xff]  }
  0x95   :  { %1865 = vmatpush1.bf16.msra.mxu1 %v4607_v46  ;;  %v4692_v46 = vld [vmem:[%s6414_s1 + $0x1c8] ss:$20 sps:$4 sm:$0xff]  }
  0x96   :  { %1866 = vmatprep.subr.bf16.mxu1 %v4615_v47  ;;  %v4691_v47 = vld [vmem:[%s6414_s1 + $0x330] ss:$20 sps:$4 sm:$0xff]  }
  0x97   :  { %1826 = vmatpush1.bf16.msra.mxu0 %v4610_v48  ;;  %v4693_v48 = vld [vmem:[%s6414_s1 + $0x88] ss:$20 sps:$4 sm:$0xff]  }
  0x98   :  { %1827 = vmatprep.subr.bf16.mxu0 %v4618_v49  ;;  %v4694_v49 = vld [vmem:[%s6414_s1 + $0x448] ss:$20 sps:$4 sm:$0xff]  }
  0x99   :  { %1867 = vmatpush1.bf16.msra.mxu1 %v4613_v50  ;;  %v4696_v50 = vld [vmem:[%s6414_s1 + $0x1a0] ss:$20 sps:$4 sm:$0xff]  }
  0x9a   :  { %1868 = vmatprep.subr.bf16.mxu1 %v4621_v51  ;;  %v4695_v51 = vld [vmem:[%s6414_s1 + $0x308] ss:$20 sps:$4 sm:$0xff]  }
  0x9b   :  { %1828 = vmatpush1.bf16.msra.mxu0 %v4616_v52  ;;  %v4698_v52 = vld [vmem:[%s6414_s1 + $0x420] ss:$20 sps:$4 sm:$0xff]  }
  0x9c   :  { %1829 = vmatprep.subr.bf16.mxu0 %v4624_v53  ;;  %v4697_v53 = vld [vmem:[%s6414_s1 + $0x60] ss:$20 sps:$4 sm:$0xff]  }
  0x9d   :  { %1869 = vmatpush1.bf16.msra.mxu1 %v4619_v54  ;;  %v4700_v54 = vld [vmem:[%s6414_s1 + $0x178] ss:$20 sps:$4 sm:$0xff]  }
  0x9e   :  { %1870 = vmatprep.subr.bf16.mxu1 %v4627_v55  ;;  %v4699_v55 = vld [vmem:[%s6414_s1 + $0x2e0] ss:$20 sps:$4 sm:$0xff]  }
  0x9f   :  { %1830 = vmatpush1.bf16.msra.mxu0 %v4622_v56  ;;  %v4702_v56 = vld [vmem:[%s6414_s1 + $0x3f8] ss:$20 sps:$4 sm:$0xff]  }
  0xa0   :  { %1831 = vmatprep.subr.bf16.mxu0 %v4630_v57  ;;  %v4701_v57 = vld [vmem:[%s6414_s1 + $0x38] ss:$20 sps:$4 sm:$0xff]  }
  0xa1   :  { %1871 = vmatpush1.bf16.msra.mxu1 %v4625_v58  ;;  %v4704_v58 = vld [vmem:[%s6414_s1 + $0x150] ss:$20 sps:$4 sm:$0xff]  }
  0xa2   :  { %1872 = vmatprep.subr.bf16.mxu1 %v4633_v59  ;;  %v4703_v59 = vld [vmem:[%s6414_s1 + $0x2b8] ss:$20 sps:$4 sm:$0xff]  }
  0xa3   :  { %1832 = vmatpush2.bf16.msra.mxu0 %v4628_v60  ;;  %v4706_v60 = vld [vmem:[%s6414_s1 + $0x3d0] ss:$20 sps:$4 sm:$0xff]  }
  0xa4   :  { %1833 = vmatprep.subr.bf16.mxu0 %v4636_v61  ;;  %v4705_v61 = vld [vmem:[%s6414_s1 + $0x10] ss:$20 sps:$4 sm:$0xff]  }
  0xa5   :  { %1873 = vmatpush2.bf16.msra.mxu1 %v4631_v0  ;;  %v4708_v0 = vld [vmem:[%s6414_s1 + $0x768] ss:$20 sps:$4 sm:$0xff]  }
  0xa6   :  { %1874 = vmatprep.subr.bf16.mxu1 %v4639_v1  ;;  %v4707_v1 = vld [vmem:[%s6414_s1 + $0x290] ss:$20 sps:$4 sm:$0xff]  }
  0xa7   :  { %1834 = vmatpush2.bf16.msra.mxu0 %v4634_v3  ;;  %v4724_v3 = vld [vmem:[%s6416_s3 + $0x78] sm:$0xff]  }
  0xa8   :  { %1835 = vmatprep.subr.bf16.mxu0 %v4642_v4  ;;  %v4709_v4 = vld [vmem:[%s6414_s1 + $0x628] ss:$20 sps:$4 sm:$0xff]  }
  0xa9   :  { %1875 = vmatpush2.bf16.msra.mxu1 %v4637_v5  ;;  %v4710_v5 = vld [vmem:[%s6414_s1 + $0x740] ss:$20 sps:$4 sm:$0xff]  }
  0xaa   :  { %1876 = vmatprep.subr.bf16.mxu1 %v4645_v6  ;;  %v4725_v6 = vld [vmem:[%s6416_s3 + $0x38] sm:$0xff]  }
  0xab   :  { %1836 = vmatpush2.bf16.msra.mxu0 %v4640_v7  ;;  %v4726_v7 = vld [vmem:[%s6416_s3 + $0x70] sm:$0xff]  }
  0xac   :  { %1837 = vmatprep.subr.bf16.mxu0 %v4648_v8  ;;  %v4711_v8 = vld [vmem:[%s6414_s1 + $0x600] ss:$20 sps:$4 sm:$0xff]  }
  0xad   :  { %1877 = vmatpush2.bf16.msra.mxu1 %v4643_v9  ;;  %v4712_v9 = vld [vmem:[%s6414_s1 + $0x718] ss:$20 sps:$4 sm:$0xff]  }
  0xae   :  { %1878 = vmatprep.subr.bf16.mxu1 %v4651_v10  ;;  %v4728_v10 = vld [vmem:[%s6416_s3 + $0x68] sm:$0xff]  }
  0xaf   :  { %1838 = vmatpush2.bf16.msra.mxu0 %v4646_v11  ;;  %v4729_v11 = vld [vmem:[%s6416_s3 + $0x28] sm:$0xff]  }
  0xb0   :  { %1839 = vmatprep.subr.bf16.mxu0 %v4654_v12  ;;  %v4730_v12 = vld [vmem:[%s6416_s3 + $0x60] sm:$0xff]  }
  0xb1   :  { %1879 = vmatpush2.bf16.msra.mxu1 %v4649_v13  ;;  %v4715_v13 = vld [vmem:[%s6414_s1 + $0x5b0] ss:$20 sps:$4 sm:$0xff]  }
  0xb2   :  { %1880 = vmatprep.subr.bf16.mxu1 %v4657_v15  ;;  %v4716_v15 = vld [vmem:[%s6414_s1 + $0x6c8] ss:$20 sps:$4 sm:$0xff]  }
  0xb3   :  { %1840 = vmatpush2.bf16.msra.mxu0 %v4652_v16  ;;  %v4731_v16 = vld [vmem:[%s6416_s3 + $0x20] sm:$0xff]  }
  0xb4   :  { %1841 = vmatprep.subr.bf16.mxu0 %v4660_v18  ;;  %v4717_v18 = vld [vmem:[%s6414_s1 + $0x588] ss:$20 sps:$4 sm:$0xff]  }
  0xb5   :  { %1881 = vmatpush2.bf16.msra.mxu1 %v4655_v17  ;;  %v4732_v17 = vld [vmem:[%s6416_s3 + $0x58] sm:$0xff]  }
  0xb6   :  { %1882 = vmatprep.subr.bf16.mxu1 %v4663_v22  ;;  %v4733_v22 = vld [vmem:[%s6416_s3 + $0x18] sm:$0xff]  }
  0xb7   :  { %1842 = vmatpush2.bf16.msra.mxu0 %v4658_v21  ;;  %v4718_v21 = vld [vmem:[%s6414_s1 + $0x6a0] ss:$20 sps:$4 sm:$0xff]  }
  0xb8   :  { %1843 = vmatprep.subr.bf16.mxu0 %v4666_v24  ;;  %v4719_v24 = vld [vmem:[%s6414_s1 + $0x560] ss:$20 sps:$4 sm:$0xff]  }
  0xb9   :  { %1883 = vmatpush2.bf16.msra.mxu1 %v4661_v23  ;;  %v4734_v23 = vld [vmem:[%s6416_s3 + $0x50] sm:$0xff]  }
  0xba   :  { %1884 = vmatprep.subr.bf16.mxu1 %v4669_v26  ;;  %v4735_v26 = vld [vmem:[%s6416_s3 + $0x10] sm:$0xff]  }
  0xbb   :  { %1844 = vmatpush2.bf16.msra.mxu0 %v4664_v25  ;;  %v4720_v25 = vld [vmem:[%s6414_s1 + $0x678] ss:$20 sps:$4 sm:$0xff]  }
  0xbc   :  { %1845 = vmatprep.subr.bf16.mxu0 %v4672_v28  ;;  %v4721_v28 = vld [vmem:[%s6414_s1 + $0x538] ss:$20 sps:$4 sm:$0xff]  }
  0xbd   :  { %1885 = vmatpush2.bf16.msra.mxu1 %v4667_v27  ;;  %v4736_v27 = vld [vmem:[%s6416_s3 + $0x48] sm:$0xff]  }
  0xbe   :  { %1886 = vmatprep.subr.bf16.mxu1 %v4675_v30  ;;  %v4737_v30 = vld [vmem:[%s6416_s3 + $0x8] sm:$0xff]  }
  0xbf   :  { %1846 = vmatpush2.bf16.msra.mxu0 %v4670_v29  ;;  %v4722_v29 = vld [vmem:[%s6414_s1 + $0x650] ss:$20 sps:$4 sm:$0xff]  }
  0xc0   :  { %4233 = vmatprep.subr.bf16.mxu0 %v4676_v32  ;;  %v4723_v32 = vld [vmem:[%s6414_s1 + $0x510] ss:$20 sps:$4 sm:$0xff]  }
  0xc1   :  { %1887 = vmatpush2.bf16.msra.mxu1 %v4673_v31  ;;  %v4738_v31 = vld [vmem:[%s6416_s3 + $0x40] sm:$0xff]  }
  0xc2   :  { %1848 = vmatmul.mubr.bf16.vlgmr.msra.gmra.mxu0 %v5251_v20  ;;  %4255 = vmatprep.subr.bf16.mxu1 %v4678_v33  ;;  %v4740_v33 = vld [vmem:[%s6416_s3 + $0xf8] sm:$0xff]  }
  0xc3   :  { %4234 = vmatpush3.bf16.msra.mxu0 %v4677_v34  ;;  %1929 = vmatprep.mubr.bf16.mxu0 %v5187_v62  ;;  %v4687_v62 = vld [vmem:[%s6414_s1 + $0x358] ss:$20 sps:$4 sm:$0xff]   ;;  %v4739_v34 = vld [vmem:[%s6416_s3] sm:$0xff]  }
  0xc4   :  { %1889 = vmatmul.mubr.bf16.vlgmr.msra.gmra.mxu1 %v5189_v63  ;;  %4235 = vmatprep.subr.bf16.mxu0 %v4680_v35  ;;  %v4741_v35 = vld [vmem:[%s6416_s3 + $0xb8] sm:$0xff]  }
  0xc5   :  { %4256 = vmatpush3.bf16.msra.mxu1 %v4679_v36  ;;  %1969 = vmatprep.mubr.bf16.mxu1 %v5200_v2  ;;  %v4689_v2 = vld [vmem:[%s6414_s1 + $0xb0] ss:$20 sps:$4 sm:$0xff]  }
  0xc6   :  { %4257 = vmatprep.subr.bf16.mxu1 %v4682_v38  ;;  %v4742_v36 = vld [vmem:[%s6416_s3 + $0xf0] sm:$0xff]  }
  0xc7   :  { %4236 = vmatpush3.bf16.msra.mxu0 %v4681_v37  ;;  %v4743_v38 = vld [vmem:[%s6416_s3 + $0xb0] sm:$0xff]  }
  0xc8   :  { %4237 = vmatprep.subr.bf16.mxu0 %v4684_v40 }
  0xc9   :  { %4258 = vmatpush3.bf16.msra.mxu1 %v4683_v39 }
  0xca   :  { %4259 = vmatprep.subr.bf16.mxu1 %v4686_v43 }
  0xcb   :  { %4238 = vmatpush3.bf16.msra.mxu0 %v4685_v41  ;;  %v4744_v41 = vld [vmem:[%s6416_s3 + $0xe8] sm:$0xff]  }
  0xcc   :  { %4239 = vmatprep.subr.bf16.mxu0 %v4688_v44  ;;  %v4745_v44 = vld [vmem:[%s6416_s3 + $0xa8] sm:$0xff]  }
  0xcd   :  { %4260 = vmatpush3.bf16.msra.mxu1 %v4687_v62 }
  0xce   :  { %4261 = vmatprep.subr.bf16.mxu1 %v4690_v45 }
  0xcf   :  { %4240 = vmatpush3.bf16.msra.mxu0 %v4689_v2  ;;  %v4746_v2 = vld [vmem:[%s6416_s3 + $0xe0] sm:$0xff]  }
  0xd0   :  { %4241 = vmatprep.subr.bf16.mxu0 %v4692_v46 }
  0xd1   :  { %4262 = vmatpush3.bf16.msra.mxu1 %v4691_v47  ;;  %v4747_v47 = vld [vmem:[%s6416_s3 + $0xa0] sm:$0xff]  }
  0xd2   :  { %4263 = vmatprep.subr.bf16.mxu1 %v4694_v49  ;;  %v4749_v49 = vld [vmem:[%s6416_s3 + $0x98] sm:$0xff]  }
  0xd3   :  { %4242 = vmatpush3.bf16.msra.mxu0 %v4693_v48  ;;  %v4748_v48 = vld [vmem:[%s6416_s3 + $0xd8] sm:$0xff]  }
  0xd4   :  { %4243 = vmatprep.subr.bf16.mxu0 %v4696_v50  ;;  %v4750_v50 = vld [vmem:[%s6416_s3 + $0xd0] sm:$0xff]  }
  0xd5   :  { %4264 = vmatpush3.bf16.msra.mxu1 %v4695_v51  ;;  %v4751_v51 = vld [vmem:[%s6416_s3 + $0x90] sm:$0xff]  }
  0xd6   :  { %4265 = vmatprep.subr.bf16.mxu1 %v4698_v52  ;;  %v4752_v52 = vld [vmem:[%s6416_s3 + $0xc8] sm:$0xff]  }
  0xd7   :  { %4244 = vmatpush3.bf16.msra.mxu0 %v4697_v53  ;;  %v4753_v53 = vld [vmem:[%s6416_s3 + $0x88] sm:$0xff]  }
  0xd8   :  { %4245 = vmatprep.subr.bf16.mxu0 %v4700_v54  ;;  %v4754_v54 = vld [vmem:[%s6416_s3 + $0xc0] sm:$0xff]  }
  0xd9   :  { %4266 = vmatpush3.bf16.msra.mxu1 %v4699_v55  ;;  %v4755_v55 = vld [vmem:[%s6416_s3 + $0x80] sm:$0xff]  }
  0xda   :  { %4267 = vmatprep.subr.bf16.mxu1 %v4702_v56  ;;  %v4974_v56 = vmov 0.0  }
  0xdb   :  { %4246 = vmatpush3.bf16.msra.mxu0 %v4701_v57  ;;  %v5885_v57 = vsub.s32 0, %v5145_v42 }
  0xdc   :  { %4247 = vmatprep.subr.bf16.mxu0 %v4704_v58  ;;  %v5890_v58 = vld [vmem:[%s6417_s2] sm:$0x1f] }
  0xdd   :  { %4268 = vmatpush3.bf16.msra.mxu1 %v4703_v59  ;;  %v5893_v59 = vsub.s32 1, %v5145_v42 }
  0xde   :  { %4269 = vmatprep.subr.bf16.mxu1 %v4706_v60  ;;  %v327_v60 = vrot.slane %v5890_v58, %v5885_v57 }
  0xdf   :  { %4248 = vmatpush3.bf16.msra.mxu0 %v4705_v61  ;;  %v331_v61 = vrot.slane %v5890_v58, %v5893_v59 }
  0xe0   :  { %4277 = vmatprep.subr.bf16.mxu0 %v4708_v0 }
  0xe1   :  { %4270 = vmatpush3.bf16.msra.mxu1 %v4707_v1 }
  0xe2   :  { %1930 = vmatmul.mubr.bf16.vlgmr.msra.gmra.mxu0 %v5233_v14  ;;  %4299 = vmatprep.subr.bf16.mxu1 %v4724_v3  ;;  %v4727_v14 = vld [vmem:[%s6416_s3 + $0x30] sm:$0xff]  }
  0xe3   :  { %4278 = vmatpush3.bf16.msra.mxu0 %v4709_v4  ;;  %2009 = vmatprep.mubr.bf16.mxu0 %v5247_v19  ;;  %v4713_v19 = vld [vmem:[%s6414_s1 + $0x5d8] ss:$20 sps:$4 sm:$0xff]  }
  0xe4   :  { %1970 = vmatmul.mubr.bf16.vlgmr.msra.gmra.mxu1 %v5251_v20  ;;  %4279 = vmatprep.subr.bf16.mxu0 %v4710_v5  ;;  %v4714_v20 = vld [vmem:[%s6414_s1 + $0x6f0] ss:$20 sps:$4 sm:$0xff]  }
  0xe5   :  { %4300 = vmatpush3.bf16.msra.mxu1 %v4725_v6 }
  0xe6   :  { %4301 = vmatprep.subr.bf16.mxu1 %v4726_v7 }
  0xe7   :  { %4280 = vmatpush3.bf16.msra.mxu0 %v4711_v8 }
  0xe8   :  { %4281 = vmatprep.subr.bf16.mxu0 %v4712_v9 }
  0xe9   :  { %4302 = vmatpush3.bf16.msra.mxu1 %v4727_v14 }
  0xea   :  { %4303 = vmatprep.subr.bf16.mxu1 %v4728_v10 }
  0xeb   :  { %4282 = vmatpush3.bf16.msra.mxu0 %v4713_v19 }
  0xec   :  { %4283 = vmatprep.subr.bf16.mxu0 %v4714_v20 }
  0xed   :  { %4304 = vmatpush3.bf16.msra.mxu1 %v4729_v11 }
  0xee   :  { %4305 = vmatprep.subr.bf16.mxu1 %v4730_v12 }
  0xef   :  { %4284 = vmatpush3.bf16.msra.mxu0 %v4715_v13 }
  0xf0   :  { %4285 = vmatprep.subr.bf16.mxu0 %v4716_v15  ;;  %v4756_v15 = vld [vmem:[%s6416_s3 + $0x118] sm:$0xff]  }
  0xf1   :  { %4306 = vmatpush3.bf16.msra.mxu1 %v4731_v16 }
  0xf2   :  { %4307 = vmatprep.subr.bf16.mxu1 %v4732_v17 }
  0xf3   :  { %4286 = vmatpush3.bf16.msra.mxu0 %v4717_v18  ;;  %v4757_v18 = vld [vmem:[%s6416_s3 + $0x110] sm:$0xff]  }
  0xf4   :  { %4287 = vmatprep.subr.bf16.mxu0 %v4718_v21  ;;  %v4758_v21 = vld [vmem:[%s6416_s3 + $0x108] sm:$0xff]  }
  0xf5   :  { %4308 = vmatpush3.bf16.msra.mxu1 %v4733_v22  ;;  %v4759_v22 = vld [vmem:[%s6416_s3 + $0x100] sm:$0xff]  }
  0xf6   :  { %4309 = vmatprep.subr.bf16.mxu1 %v4734_v23  ;;  %v5912_v23 = vsub.s32 2, %v5145_v42 }
  0xf7   :  { %4288 = vmatpush3.bf16.msra.mxu0 %v4719_v24  ;;  %v5915_v24 = vsub.s32 3, %v5145_v42 }
  0xf8   :  { %4289 = vmatprep.subr.bf16.mxu0 %v4720_v25  ;;  %v335_v25 = vrot.slane %v5890_v58, %v5912_v23 }
  0xf9   :  { %4310 = vmatpush3.bf16.msra.mxu1 %v4735_v26  ;;  %v339_v26 = vrot.slane %v5890_v58, %v5915_v24 }
  0xfa   :  { %4311 = vmatprep.subr.bf16.mxu1 %v4736_v27 }
  0xfb   :  { %4290 = vmatpush3.bf16.msra.mxu0 %v4721_v28 }
  0xfc   :  { %4291 = vmatprep.subr.bf16.mxu0 %v4722_v29 }
  0xfd   :  { %4312 = vmatpush3.bf16.msra.mxu1 %v4737_v30 }
  0xfe   :  { %4313 = vmatprep.subr.bf16.mxu1 %v4738_v31 }
  0xff   :  { %4292 = vmatpush3.bf16.msra.mxu0 %v4723_v32 }
 0x100   :  { %4321 = vmatprep.subr.bf16.mxu0 %v4740_v33 }
 0x101   :  { %4314 = vmatpush3.bf16.msra.mxu1 %v4739_v34 }
 0x102   :  { %v1685_v37 = vpop.f32.mrf.mxu0  ;;  %2010 = vmatmul.mubr.bf16.vlgmr.msra.gmra.mxu0 %v5189_v63  ;;  %4370 = vmatprep.subr.bf16.mxu1 %v4974_v56 }
 0x103   :  { %4322 = vmatpush3.bf16.msra.mxu0 %v4741_v35  ;;  %v1686_v0 = vadd.f32 %v1685_v37, %v327_v60 }
 0x104   :  { %v1687_v39 = vpop.f32.mrf.mxu0  ;;  %v1726_v40 = vpop.f32.mrf.mxu1  ;;  %4323 = vmatprep.subr.bf16.mxu0 %v4742_v36 }
 0x105   :  { %v1688_v1 = vadd.f32 %v1687_v39, %v331_v61  ;;  %v1727_v3 = vadd.f32 %v1726_v40, %v1686_v0 }
 0x106   :  { %v1689_v43 = vpop.f32.mrf.mxu0  ;;  %v1728_v62 = vpop.f32.mrf.mxu1 }
 0x107   :  { %4324 = vmatpush3.bf16.msra.mxu0 %v4743_v38  ;;  %v1729_v5 = vadd.f32 %v1728_v62, %v1688_v1 }
 0x108   :  { %v1690_v63 = vpop.f32.mrf.mxu0  ;;  %v1730_v45 = vpop.f32.mrf.mxu1  ;;  %4325 = vmatprep.subr.bf16.mxu0 %v4744_v41 }
 0x10a   :  { %v1731_v46 = vpop.f32.mrf.mxu1 }
 0x10b   :  { %4326 = vmatpush3.bf16.msra.mxu0 %v4745_v44 }
 0x10c   :  { %4327 = vmatprep.subr.bf16.mxu0 %v4746_v2 }
 0x10f   :  { %4328 = vmatpush3.bf16.msra.mxu0 %v4747_v47 }
 0x110   :  { %4329 = vmatprep.subr.bf16.mxu0 %v4748_v48 }
 0x113   :  { %4330 = vmatpush3.bf16.msra.mxu0 %v4749_v49 }
 0x114   :  { %4331 = vmatprep.subr.bf16.mxu0 %v4750_v50 }
 0x117   :  { %4332 = vmatpush3.bf16.msra.mxu0 %v4751_v51  ;;  %v342_v51 = vsub.s32 4, %v5145_v42 }
 0x118   :  { %4333 = vmatprep.subr.bf16.mxu0 %v4752_v52 }
 0x119   :  { %v343_v52 = vrot.slane %v5890_v58, %v342_v51  ;;  %v2465_v58 = vld [vmem:[%s6418_s5 + $0x88] sm:$0xff] }
 0x11b   :  { %4334 = vmatpush3.bf16.msra.mxu0 %v4753_v53 }
 0x11c   :  { %4335 = vmatprep.subr.bf16.mxu0 %v4754_v54 }
 0x11f   :  { %4336 = vmatpush3.bf16.msra.mxu0 %v4755_v55 }
 0x142   :  { %v1767_v4 = vpop.f32.mrf.mxu0 }
 0x143   :  { %v1768_v6 = vadd.f32 %v1767_v4, %v1727_v3 }
 0x144   :  { %v1769_v7 = vpop.f32.mrf.mxu0  ;;  %v1808_v8 = vpop.f32.mrf.mxu1 }
 0x145   :  { %v1770_v9 = vadd.f32 %v1769_v7, %v1729_v5  ;;  %v2017_v14 = vmax.f32 %v1768_v6, 0.0  ;;  %v1809_v27 = vadd.f32 %v1808_v8, %v335_v25  ;;  %v2464_v7 = vld [vmem:[%s6418_s5 + $0x80] sm:$0xff]  ;;  %v4781_v25 = vld [vmem:[%s6418_s5 + $0x2c] ss:$16 sps:$4 sm:$0xff]  }
 0x146   :  { %v1771_v10 = vpop.f32.mrf.mxu0  ;;  %v1810_v19 = vpop.f32.mrf.mxu1  ;;  %v4098_v8 = vcombine.high %v2464_v7, %v2464_v7 }
 0x147   :  { %v2018_v20 = vmax.f32 %v1770_v9, 0.0  ;;  %v2022_v16 = vpack.c.bf16 %v2017_v14, %v2017_v14  ;;  %v1811_v29 = vadd.f32 %v1810_v19, %v339_v26  ;;  %v4100_v9 = vcombine.high %v2465_v58, %v2465_v58  ;;  %v4766_v19 = vld [vmem:[%s6418_s5 + $0x64] ss:$16 sps:$4 sm:$0xff]   ;;  %v4776_v26 = vld [vmem:[%s6418_s5 + $0x20] ss:$16 sps:$4 sm:$0xff]  }
 0x148   :  { %v1772_v11 = vpop.f32.mrf.mxu0  ;;  %v1812_v12 = vpop.f32.mrf.mxu1  ;;  %v4097_v14 = vcombine.low %v2464_v7, %v2464_v7  ;;  %v4099_v10 = vcombine.low %v2465_v58, %v2465_v58  ;;  %v4832_v7 = vld [vmem:[%s6419_s7 + $0x324] ss:$20 sps:$4 sm:$0xff]   ;;  %v4797_v58 = vld [vmem:[%s6419_s7 + $0xa0] ss:$20 sps:$4 sm:$0xff]  }
 0x149   :  { %v2023_v13 = vpack.c.bf16 %v2018_v20, %v2018_v20  ;;  %4103 = vmatprep.subr.msk.bf16.mxu0 %vm2582_vm2, %v4100_v9  ;;  %v4769_v12 = vld [vmem:[%s6418_s5 + $0x6c] ss:$16 sps:$4 sm:$0xff]  }
 0x14a   :  { %v1813_v17 = vpop.f32.mrf.mxu1  ;;  %v2584_v20 = vsel %vm2582_vm2, %v4097_v14, 0  ;;  %v2590_v11 = vsel %vm2582_vm2, %v4099_v10, 0  ;;  %v4802_v9 = vld [vmem:[%s6419_s7 + $0x7c] ss:$20 sps:$4 sm:$0xff]   ;;  %v4800_v10 = vld [vmem:[%s6419_s7 + $0x78] ss:$20 sps:$4 sm:$0xff]  }
 0x14b   :  { %2358 = vmatprep.mubr.bf16.mxu1 %v2023_v13  ;;  %v4764_v13 = vld [vmem:[%s6418_s5 + $0x60] ss:$16 sps:$4 sm:$0xff]   ;;  %v4775_v17 = vld [vmem:[%s6418_s5 + $0x4c] ss:$16 sps:$4 sm:$0xff]  }
 0x14c   :  { %2359 = vmatmul.mubr.bf16.vlgmr.msra.gmra.mxu1 %v2022_v16  ;;  %v4772_v16 = vld [vmem:[%s6418_s5 + $0x44] ss:$16 sps:$4 sm:$0xff]   ;;  %v4838_v14 = vld [vmem:[%s6419_s7 + $0x2fc] ss:$20 sps:$4 sm:$0xff]  }
 0x14d   :  { %4371 = vmatpush3.bf16.msra.mxu1 %v4756_v15  ;;  %4378 = vmatprep.mubr.msk.bf16.mxu1 %vm4975_vm0, %v4974_v56  ;;  %v4767_v15 = vld [vmem:[%s6418_s5 + $0x68] ss:$16 sps:$4 sm:$0xff]  }
 0x14e   :  { %4372 = vmatprep.subr.bf16.mxu1 %v4974_v56 }
 0x151   :  { %4373 = vmatpush3.bf16.msra.mxu1 %v4757_v18  ;;  %v4770_v18 = vld [vmem:[%s6418_s5 + $0x40] ss:$16 sps:$4 sm:$0xff]  }
 0x152   :  { %4374 = vmatprep.subr.bf16.mxu1 %v4974_v56 }
 0x155   :  { %4375 = vmatpush3.bf16.msra.mxu1 %v4758_v21  ;;  %v4773_v21 = vld [vmem:[%s6418_s5 + $0x48] ss:$16 sps:$4 sm:$0xff]  }
 0x156   :  { %4376 = vmatprep.subr.bf16.mxu1 %v4974_v56 }
 0x159   :  { %4377 = vmatpush3.bf16.msra.mxu1 %v4759_v22  ;;  %v4778_v22 = vld [vmem:[%s6418_s5 + $0x24] ss:$16 sps:$4 sm:$0xff]  }
 0x15a   :  { %4101 = vmatprep.subr.msk.bf16.mxu1 %vm2582_vm2, %v4098_v8  ;;  %v4830_v8 = vld [vmem:[%s6419_s7 + $0x320] ss:$20 sps:$4 sm:$0xff]  }
 0x182   :  { %v1849_v28 = vpop.f32.mrf.mxu0 }
 0x183   :  { %v1850_v30 = vadd.f32 %v1849_v28, %v1809_v27  ;;  %v4779_v27 = vld [vmem:[%s6418_s5 + $0x28] ss:$16 sps:$4 sm:$0xff]  }
 0x184   :  { %v1851_v31 = vpop.f32.mrf.mxu0  ;;  %v1890_v32 = vpop.f32.mrf.mxu1 }
 0x185   :  { %v1852_v33 = vadd.f32 %v1851_v31, %v1811_v29  ;;  %v1891_v34 = vadd.f32 %v1890_v32, %v1850_v30  ;;  %v4784_v30 = vld [vmem:[%s6418_s5 + $0x4] ss:$16 sps:$4 sm:$0xff]   ;;  %v4787_v31 = vld [vmem:[%s6418_s5 + $0xc] ss:$16 sps:$4 sm:$0xff]  }
 0x186   :  { %v1853_v35 = vpop.f32.mrf.mxu0  ;;  %v1892_v36 = vpop.f32.mrf.mxu1 }
 0x187   :  { %v1893_v37 = vadd.f32 %v1892_v36, %v1852_v33  ;;  %v2019_v38 = vmax.f32 %v1891_v34, 0.0  ;;  %v4782_v33 = vld [vmem:[%s6418_s5] ss:$16 sps:$4 sm:$0xff]   ;;  %v4785_v34 = vld [vmem:[%s6418_s5 + $0x8] ss:$16 sps:$4 sm:$0xff]  }
 0x188   :  { %v1854_v39 = vpop.f32.mrf.mxu0  ;;  %v1894_v40 = vpop.f32.mrf.mxu1 }
 0x189   :  { %v2020_v41 = vmax.f32 %v1893_v37, 0.0  ;;  %v2024_v44 = vpack.c.bf16 %v2019_v38, %v2019_v38  ;;  %v4976_v37 = vmov 0   ;;  %v4790_v38 = vld [vmem:[%s6419_s7 + $0x11c] ss:$20 sps:$4 sm:$0xff]  }
 0x18a   :  { %v1895_v43 = vpop.f32.mrf.mxu1  ;;  %v4814_v39 = vld [vmem:[%s6419_s7 + $0x39c] ss:$20 sps:$4 sm:$0xff]  }
 0x18b   :  { %v2025_v62 = vpack.c.bf16 %v2020_v41, %v2020_v41 }
 0x18d   :  { %2398 = vmatprep.mubr.bf16.mxu0 %v2025_v62 }
 0x18e   :  { %2399 = vmatmul.mubr.bf16.vlgmr.msra.gmra.mxu0 %v2024_v44  ;;  %v4043_v44 = vld [vmem:[%s6420_s4] ss:$0 sm:$0xff] }
 0x18f   :  { %2643 = vmatpush1.bf16.msra.mxu0 %v2590_v11  ;;  %2668 = vmatprep.mubr.bf16.mxu0 %v4976_v37  ;;  %v4844_v11 = vld [vmem:[%s6419_s7 + $0x2d4] ss:$20 sps:$4 sm:$0xff]  }
 0x190   :  { %2644 = vmatprep.subr.bf16.mxu0 %v4769_v12  ;;  %v4803_v12 = vld [vmem:[%s6419_s7 + $0x50] ss:$20 sps:$4 sm:$0xff]  }
 0x193   :  { %2645 = vmatpush1.bf16.msra.mxu0 %v4767_v15  ;;  %v4808_v15 = vld [vmem:[%s6419_s7 + $0x2c] ss:$20 sps:$4 sm:$0xff]  }
 0x194   :  { %2646 = vmatprep.subr.bf16.mxu0 %v4775_v17  ;;  %v4806_v17 = vld [vmem:[%s6419_s7 + $0x28] ss:$20 sps:$4 sm:$0xff]  }
 0x197   :  { %2647 = vmatpush1.bf16.msra.mxu0 %v4773_v21  ;;  %v4811_v21 = vld [vmem:[%s6419_s7 + $0x4] ss:$20 sps:$4 sm:$0xff]  }
 0x198   :  { %2648 = vmatprep.subr.bf16.mxu0 %v4781_v25  ;;  %v4817_v25 = vld [vmem:[%s6419_s7 + $0x25c] ss:$20 sps:$4 sm:$0xff]  }
 0x19b   :  { %2649 = vmatpush1.bf16.msra.mxu0 %v4779_v27  ;;  %v4823_v27 = vld [vmem:[%s6419_s7 + $0x234] ss:$20 sps:$4 sm:$0xff]  }
 0x19c   :  { %2650 = vmatprep.subr.bf16.mxu0 %v4787_v31  ;;  %v4835_v31 = vld [vmem:[%s6419_s7 + $0x1e4] ss:$20 sps:$4 sm:$0xff]  }
 0x19f   :  { %2651 = vmatpush1.bf16.msra.mxu0 %v4785_v34  ;;  %v4839_v34 = vld [vmem:[%s6419_s7 + $0x1b8] ss:$20 sps:$4 sm:$0xff]  }
 0x1a0   :  { %3557 = vmatprep.subr.bf16.mxu0 %v4814_v39  ;;  %v4856_v39 = vld [vmem:[%s6419_s7 + $0x284] ss:$20 sps:$4 sm:$0xff]  }
 0x1a2   :  { %v4249_v63 = vpop.f32.mrf.mxu0 }
 0x1a4   :  { %v4250_v45 = vpop.f32.mrf.mxu0  ;;  %v4271_v2 = vpop.f32.mrf.mxu1 }
 0x1a5   :  { %v4251_v53 = vadd.f32 %v4250_v45, %v4249_v63 }
 0x1a6   :  { %v4252_v46 = vpop.f32.mrf.mxu0  ;;  %v4272_v47 = vpop.f32.mrf.mxu1 }
 0x1a7   :  { %v1932_v54 = vadd.f32 %v4251_v53, %v343_v52  ;;  %v4273_v55 = vadd.f32 %v4272_v47, %v4271_v2  ;;  %v4788_v52 = vld [vmem:[%s6419_s7 + $0x118] ss:$20 sps:$4 sm:$0xff]  }
 0x1a8   :  { %v4253_v48 = vpop.f32.mrf.mxu0  ;;  %v4274_v49 = vpop.f32.mrf.mxu1  ;;  %v4812_v53 = vld [vmem:[%s6419_s7 + $0x398] ss:$20 sps:$4 sm:$0xff]  }
 0x1a9   :  { %v1972_v61 = vadd.f32 %v4273_v55, %v1932_v54  ;;  %v4793_v55 = vld [vmem:[%s6419_s7 + $0xf4] ss:$20 sps:$4 sm:$0xff]  }
 0x1aa   :  { %v4275_v50 = vpop.f32.mrf.mxu1 }
 0x1c2   :  { %v4293_v56 = vpop.f32.mrf.mxu0 }
 0x1c4   :  { %v4294_v60 = vpop.f32.mrf.mxu0 }
 0x1c5   :  { %v4295_v0 = vadd.f32 %v4294_v60, %v4293_v56  ;;  %v4820_v56 = vld [vmem:[%s6419_s7 + $0x374] ss:$20 sps:$4 sm:$0xff]  }
 0x1c6   :  { %v4296_v1 = vpop.f32.mrf.mxu0 }
 0x1c7   :  { %v2012_v3 = vadd.f32 %v4295_v0, %v1972_v61  ;;  %v4791_v61 = vld [vmem:[%s6419_s7 + $0xf0] ss:$20 sps:$4 sm:$0xff]   ;;  %v4796_v1 = vld [vmem:[%s6419_s7 + $0xcc] ss:$20 sps:$4 sm:$0xff]  }
 0x1c8   :  { %v4297_v4 = vpop.f32.mrf.mxu0  ;;  %v4818_v0 = vld [vmem:[%s6419_s7 + $0x370] ss:$20 sps:$4 sm:$0xff]  }
 0x1c9   :  { %v2021_v5 = vmax.f32 %v2012_v3, 0.0  ;;  %v4826_v3 = vld [vmem:[%s6419_s7 + $0x34c] ss:$20 sps:$4 sm:$0xff]   ;;  %v4794_v4 = vld [vmem:[%s6419_s7 + $0xc8] ss:$20 sps:$4 sm:$0xff]  }
 0x1cb   :  { %v2026_v6 = vpack.c.bf16 %v2021_v5, %v2021_v5  ;;  %v4824_v5 = vld [vmem:[%s6419_s7 + $0x348] ss:$20 sps:$4 sm:$0xff]  }
 0x1cd   :  { %4379 = vmatmul.mubr.msk.bf16.vlgmr.msra.gmra.mxu1 %vm2322_vm1, %v2026_v6  ;;  %v4799_v6 = vld [vmem:[%s6419_s7 + $0xa4] ss:$20 sps:$4 sm:$0xff]  }
 0x1ce   :  { %2602 = vmatpush1.bf16.msra.mxu1 %v2584_v20  ;;  %2627 = vmatprep.mubr.bf16.mxu1 %v4976_v37  ;;  %v4805_v20 = vld [vmem:[%s6419_s7 + $0x54] ss:$20 sps:$4 sm:$0xff]  }
 0x1cf   :  { %2603 = vmatprep.subr.bf16.mxu1 %v4766_v19  ;;  %v4836_v19 = vld [vmem:[%s6419_s7 + $0x2f8] ss:$20 sps:$4 sm:$0xff]  }
 0x1d2   :  { %2604 = vmatpush1.bf16.msra.mxu1 %v4764_v13  ;;  %v4842_v13 = vld [vmem:[%s6419_s7 + $0x2d0] ss:$20 sps:$4 sm:$0xff]  }
 0x1d3   :  { %2605 = vmatprep.subr.bf16.mxu1 %v4772_v16  ;;  %v4850_v16 = vld [vmem:[%s6419_s7 + $0x2ac] ss:$20 sps:$4 sm:$0xff]  }
 0x1d6   :  { %2606 = vmatpush1.bf16.msra.mxu1 %v4770_v18  ;;  %v4848_v18 = vld [vmem:[%s6419_s7 + $0x2a8] ss:$20 sps:$4 sm:$0xff]  }
 0x1d7   :  { %2607 = vmatprep.subr.bf16.mxu1 %v4778_v22  ;;  %v4809_v22 = vld [vmem:[%s6419_s7] ss:$20 sps:$4 sm:$0xff]  }
 0x1da   :  { %2608 = vmatpush1.bf16.msra.mxu1 %v4776_v26  ;;  %v4815_v26 = vld [vmem:[%s6419_s7 + $0x258] ss:$20 sps:$4 sm:$0xff]  }
 0x1db   :  { %2609 = vmatprep.subr.bf16.mxu1 %v4784_v30  ;;  %v4827_v30 = vld [vmem:[%s6419_s7 + $0x208] ss:$20 sps:$4 sm:$0xff]  }
 0x1de   :  { %2610 = vmatpush1.bf16.msra.mxu1 %v4782_v33  ;;  %v4841_v33 = vld [vmem:[%s6419_s7 + $0x1bc] ss:$20 sps:$4 sm:$0xff]  }
 0x1df   :  { %3516 = vmatprep.subr.bf16.mxu1 %v4790_v38  ;;  %v4853_v38 = vld [vmem:[%s6419_s7 + $0x16c] ss:$20 sps:$4 sm:$0xff]  }
 0x20c   :  { %v4315_v28 = vpop.f32.mrf.mxu1 }
 0x20e   :  { %v4316_v29 = vpop.f32.mrf.mxu1 }
 0x20f   :  { %v4317_v32 = vadd.f32 %v4316_v29, %v4315_v28  ;;  %v4821_v28 = vld [vmem:[%s6419_s7 + $0x230] ss:$20 sps:$4 sm:$0xff]   ;;  %v4829_v29 = vld [vmem:[%s6419_s7 + $0x20c] ss:$20 sps:$4 sm:$0xff]  }
 0x210   :  { %v4318_v35 = vpop.f32.mrf.mxu1 }
 0x211   :  { %v2361_v45 = vadd.f32 %v4317_v32, %v4043_v44  ;;  %v4833_v32 = vld [vmem:[%s6419_s7 + $0x1e0] ss:$20 sps:$4 sm:$0xff]  }
 0x212   :  { %v4319_v36 = vpop.f32.mrf.mxu1  ;;  %v4847_v35 = vld [vmem:[%s6419_s7 + $0x194] ss:$20 sps:$4 sm:$0xff]  }
 0x213   :  { %v4845_v36 = vld [vmem:[%s6419_s7 + $0x190] ss:$20 sps:$4 sm:$0xff]   ;;  %v4857_v44 = vld [vmem:[%s6419_s7 + $0x140] ss:$20 sps:$4 sm:$0xff]  }
 0x24e   :  { %v4337_v40 = vpop.f32.mrf.mxu0 }
 0x250   :  { %v4338_v41 = vpop.f32.mrf.mxu0 }
 0x251   :  { %v4339_v63 = vadd.f32 %v4338_v41, %v4337_v40  ;;  %v4851_v40 = vld [vmem:[%s6419_s7 + $0x168] ss:$20 sps:$4 sm:$0xff]   ;;  %v4854_v41 = vld [vmem:[%s6419_s7 + $0x280] ss:$20 sps:$4 sm:$0xff]  }
 0x252   :  { %v4340_v43 = vpop.f32.mrf.mxu0 }
 0x253   :  { %v2401_v2 = vadd.f32 %v4339_v63, %v2361_v45  ;;  %v4859_v43 = vld [vmem:[%s6419_s7 + $0x144] ss:$20 sps:$4 sm:$0xff]   ;;  %v4860_v63 = vld [vmem:[%s6419_s7 + $0x3c0] ss:$20 sps:$4 sm:$0xff]  }
 0x254   :  { %v4341_v62 = vpop.f32.mrf.mxu0  ;;  %v4865_v45 = vld [vmem:[%s6419_s7 + $0x124] ss:$20 sps:$4 sm:$0xff]  }
 0x255   :  { %v4862_v62 = vld [vmem:[%s6419_s7 + $0x3c4] ss:$20 sps:$4 sm:$0xff]  }
 0x28d   :  { %v2440_v46 = vpop.f32.mrf.mxu1 }
 0x28e   :  { %v2441_v47 = vadd.f32 %v2440_v46, %v2401_v2  ;;  %v4868_v2 = vld [vmem:[%s6419_s7 + $0x3a4] ss:$20 sps:$4 sm:$0xff]   ;;  %v2466_v46 = vld [vmem:[%s6421_s6] sm:$0xf] }
 0x28f   :  { %v4380_v48 = vpop.f32.mrf.mxu1 }
 0x290   :  { %v2446_v49 = vmax.f32 %v2441_v47, 0.0  ;;  %v2471_v47 = vrot.slane %v2466_v46, %v5885_v57  ;;  %v2479_v48 = vrot.slane %v2466_v46, %v5912_v23 }
 0x291   :  { %v2443_v50 = vpop.f32.mrf.mxu1 }
 0x292   :  { %v2447_v54 = vpack.c.bf16 %v2446_v49, %v2446_v49  ;;  %v2475_v49 = vrot.slane %v2466_v46, %v5893_v59  ;;  %v2483_v50 = vrot.slane %v2466_v46, %v5915_v24  ;;  %v4911_v46 = vld [vmem:[%s6419_s7 + $0x260] ss:$20 sps:$4 sm:$0xff]  }
 0x293   :  { %v4381_v60 = vpop.f32.mrf.mxu1 }
 0x294   :  { %4102 = vmatmul.mubr.msk.bf16.vlgmr.msra.gmra.mxu1 %vm2578_vm3, %v2447_v54  ;;  %4104 = vmatmul.mubr.msk.bf16.vlgmr.msra.gmra.mxu0 %vm2578_vm3, %v2447_v54 }
 0x295   :  { %3517 = vmatpush1.bf16.msra.mxu1 %v4788_v52  ;;  %3558 = vmatpush1.bf16.msra.mxu0 %v4812_v53 }
 0x296   :  { %3518 = vmatprep.subr.bf16.mxu1 %v4793_v55  ;;  %3559 = vmatprep.subr.bf16.mxu0 %v4820_v56 }
 0x299   :  { %3519 = vmatpush1.bf16.msra.mxu1 %v4791_v61  ;;  %3560 = vmatpush1.bf16.msra.mxu0 %v4818_v0 }
 0x29a   :  { %3520 = vmatprep.subr.bf16.mxu1 %v4796_v1  ;;  %3561 = vmatprep.subr.bf16.mxu0 %v4826_v3 }
 0x29d   :  { %3521 = vmatpush1.bf16.msra.mxu1 %v4794_v4  ;;  %3562 = vmatpush1.bf16.msra.mxu0 %v4824_v5 }
 0x29e   :  { %3522 = vmatprep.subr.bf16.mxu1 %v4799_v6  ;;  %3563 = vmatprep.subr.bf16.mxu0 %v4832_v7 }
 0x2a1   :  { %3523 = vmatpush1.bf16.msra.mxu1 %v4797_v58  ;;  %3564 = vmatpush1.bf16.msra.mxu0 %v4830_v8 }
 0x2a2   :  { %3524 = vmatprep.subr.bf16.mxu1 %v4802_v9  ;;  %3565 = vmatprep.subr.bf16.mxu0 %v4838_v14 }
 0x2a5   :  { %3525 = vmatpush1.bf16.msra.mxu1 %v4800_v10  ;;  %3566 = vmatpush1.bf16.msra.mxu0 %v4836_v19  ;;  %v4863_v10 = vld [vmem:[%s6419_s7 + $0x120] ss:$20 sps:$4 sm:$0xff]  }
 0x2a6   :  { %3526 = vmatprep.subr.bf16.mxu1 %v4805_v20  ;;  %3567 = vmatprep.subr.bf16.mxu0 %v4844_v11  ;;  %v4866_v19 = vld [vmem:[%s6419_s7 + $0x3a0] ss:$20 sps:$4 sm:$0xff]  }
 0x2a9   :  { %3527 = vmatpush1.bf16.msra.mxu1 %v4803_v12  ;;  %3568 = vmatpush1.bf16.msra.mxu0 %v4842_v13  ;;  %v4871_v12 = vld [vmem:[%s6419_s7 + $0xfc] ss:$20 sps:$4 sm:$0xff]  }
 0x2aa   :  { %3528 = vmatprep.subr.bf16.mxu1 %v4808_v15  ;;  %3569 = vmatprep.subr.bf16.mxu0 %v4850_v16  ;;  %v4874_v13 = vld [vmem:[%s6419_s7 + $0x37c] ss:$20 sps:$4 sm:$0xff]   ;;  %v4869_v15 = vld [vmem:[%s6419_s7 + $0xf8] ss:$20 sps:$4 sm:$0xff]  }
 0x2ab   :  { %v4872_v16 = vld [vmem:[%s6419_s7 + $0x378] ss:$20 sps:$4 sm:$0xff]  }
 0x2ad   :  { %3529 = vmatpush1.bf16.msra.mxu1 %v4806_v17  ;;  %3570 = vmatpush1.bf16.msra.mxu0 %v4848_v18  ;;  %v4877_v17 = vld [vmem:[%s6419_s7 + $0xd4] ss:$20 sps:$4 sm:$0xff]  }
 0x2ae   :  { %3530 = vmatprep.subr.bf16.mxu1 %v4811_v21  ;;  %3571 = vmatprep.subr.bf16.mxu0 %v4856_v39  ;;  %v4880_v18 = vld [vmem:[%s6419_s7 + $0x354] ss:$20 sps:$4 sm:$0xff]   ;;  %v4875_v21 = vld [vmem:[%s6419_s7 + $0xd0] ss:$20 sps:$4 sm:$0xff]  }
 0x2af   :  { %v4904_v39 = vld [vmem:[%s6419_s7 + $0x2b4] ss:$20 sps:$4 sm:$0xff]  }
 0x2b1   :  { %3531 = vmatpush1.bf16.msra.mxu1 %v4809_v22  ;;  %3572 = vmatpush1.bf16.msra.mxu0 %v4854_v41  ;;  %v4878_v22 = vld [vmem:[%s6419_s7 + $0x350] ss:$20 sps:$4 sm:$0xff]  }
 0x2b2   :  { %3532 = vmatprep.subr.bf16.mxu1 %v4817_v25  ;;  %3587 = vmatprep.subr.bf16.mxu0 %v4862_v62  ;;  %v4883_v25 = vld [vmem:[%s6419_s7 + $0xac] ss:$20 sps:$4 sm:$0xff]   ;;  %v4902_v41 = vld [vmem:[%s6419_s7 + $0x2b0] ss:$20 sps:$4 sm:$0xff]  }
 0x2b3   :  { %v4910_v62 = vld [vmem:[%s6419_s7 + $0x28c] ss:$20 sps:$4 sm:$0xff]  }
 0x2b5   :  { %3533 = vmatpush2.bf16.msra.mxu1 %v4815_v26  ;;  %3588 = vmatpush2.bf16.msra.mxu0 %v4860_v63  ;;  %v4886_v26 = vld [vmem:[%s6419_s7 + $0x32c] ss:$20 sps:$4 sm:$0xff]   ;;  %v4908_v63 = vld [vmem:[%s6419_s7 + $0x288] ss:$20 sps:$4 sm:$0xff]  }
 0x2b6   :  { %3534 = vmatprep.subr.bf16.mxu1 %v4823_v27  ;;  %3598 = vmatprep.subr.bf16.mxu0 %v4865_v45  ;;  %v4881_v27 = vld [vmem:[%s6419_s7 + $0xa8] ss:$20 sps:$4 sm:$0xff]   ;;  %v4913_v45 = vld [vmem:[%s6419_s7 + $0x264] ss:$20 sps:$4 sm:$0xff]  }
 0x2b9   :  { %3535 = vmatpush2.bf16.msra.mxu1 %v4821_v28  ;;  %v4884_v28 = vld [vmem:[%s6419_s7 + $0x328] ss:$20 sps:$4 sm:$0xff]  }
 0x2ba   :  { %3536 = vmatprep.subr.bf16.mxu1 %v4829_v29  ;;  %v4889_v29 = vld [vmem:[%s6419_s7 + $0x84] ss:$20 sps:$4 sm:$0xff]  }
 0x2bd   :  { %3537 = vmatpush2.bf16.msra.mxu1 %v4827_v30  ;;  %v4892_v30 = vld [vmem:[%s6419_s7 + $0x304] ss:$20 sps:$4 sm:$0xff]  }
 0x2be   :  { %3538 = vmatprep.subr.bf16.mxu1 %v4835_v31  ;;  %v4887_v31 = vld [vmem:[%s6419_s7 + $0x80] ss:$20 sps:$4 sm:$0xff]  }
 0x2c1   :  { %3539 = vmatpush2.bf16.msra.mxu1 %v4833_v32  ;;  %v4890_v32 = vld [vmem:[%s6419_s7 + $0x300] ss:$20 sps:$4 sm:$0xff]  }
 0x2c2   :  { %3540 = vmatprep.subr.bf16.mxu1 %v4841_v33  ;;  %v4895_v33 = vld [vmem:[%s6419_s7 + $0x5c] ss:$20 sps:$4 sm:$0xff]  }
 0x2c5   :  { %3541 = vmatpush2.bf16.msra.mxu1 %v4839_v34  ;;  %v4898_v34 = vld [vmem:[%s6419_s7 + $0x2dc] ss:$20 sps:$4 sm:$0xff]  }
 0x2c6   :  { %3542 = vmatprep.subr.bf16.mxu1 %v4847_v35  ;;  %v4893_v35 = vld [vmem:[%s6419_s7 + $0x58] ss:$20 sps:$4 sm:$0xff]  }
 0x2c9   :  { %3543 = vmatpush2.bf16.msra.mxu1 %v4845_v36  ;;  %v4896_v36 = vld [vmem:[%s6419_s7 + $0x2d8] ss:$20 sps:$4 sm:$0xff]  }
 0x2ca   :  { %3544 = vmatprep.subr.bf16.mxu1 %v4853_v38  ;;  %v4901_v38 = vld [vmem:[%s6419_s7 + $0x34] ss:$20 sps:$4 sm:$0xff]  }
 0x2cd   :  { %3545 = vmatpush2.bf16.msra.mxu1 %v4851_v40  ;;  %v4899_v40 = vld [vmem:[%s6419_s7 + $0x30] ss:$20 sps:$4 sm:$0xff]  }
 0x2ce   :  { %3546 = vmatprep.subr.bf16.mxu1 %v4859_v43  ;;  %v4907_v43 = vld [vmem:[%s6419_s7 + $0xc] ss:$20 sps:$4 sm:$0xff]  }
 0x2d1   :  { %3547 = vmatpush2.bf16.msra.mxu1 %v4857_v44  ;;  %v4905_v44 = vld [vmem:[%s6419_s7 + $0x8] ss:$20 sps:$4 sm:$0xff]  }
 0x2d2   :  { %3639 = vmatprep.subr.bf16.mxu1 %v4868_v2  ;;  %v4916_v2 = vld [vmem:[%s6419_s7 + $0x3cc] ss:$20 sps:$4 sm:$0xff]  }
 0x354   :  { %v2629_v52 = vpop.f32.mrf.mxu1  ;;  %v2670_v53 = vpop.f32.mrf.mxu0 }
 0x355   :  { %v2630_v54 = vadd.f32 %v2629_v52, %v2471_v47  ;;  %v2671_v55 = vadd.f32 %v2670_v53, %v2479_v48  ;;  %v4914_v47 = vld [vmem:[%s6419_s7 + $0x3c8] ss:$20 sps:$4 sm:$0xff]  }
 0x356   :  { %v2631_v56 = vpop.f32.mrf.mxu1  ;;  %v2672_v60 = vpop.f32.mrf.mxu0  ;;  %v4919_v48 = vld [vmem:[%s6419_s7 + $0x23c] ss:$20 sps:$4 sm:$0xff]   ;;  %v4924_v53 = vld [vmem:[%s6419_s7 + $0x214] ss:$20 sps:$4 sm:$0xff]  }
 0x357   :  { %v2632_v61 = vadd.f32 %v2631_v56, %v2475_v49  ;;  %v2673_v0 = vadd.f32 %v2672_v60, %v2483_v50  ;;  %v2677_v1 = vmax.f32 %v2630_v54, 0.0  ;;  %v2679_v3 = vmax.f32 %v2671_v55, 0.0  ;;  %v4920_v49 = vld [vmem:[%s6419_s7 + $0x268] ss:$20 sps:$4 sm:$0xff]   ;;  %v4917_v50 = vld [vmem:[%s6419_s7 + $0x238] ss:$20 sps:$4 sm:$0xff]  }
 0x358   :  { %v2633_v4 = vpop.f32.mrf.mxu1  ;;  %v2674_v5 = vpop.f32.mrf.mxu0  ;;  %v4921_v52 = vld [vmem:[%s6419_s7 + $0x128] ss:$20 sps:$4 sm:$0xff]   ;;  %v4925_v54 = vld [vmem:[%s6419_s7 + $0x240] ss:$20 sps:$4 sm:$0xff]   ;;  %v4922_v55 = vld [vmem:[%s6419_s7 + $0x210] ss:$20 sps:$4 sm:$0xff]  }
 0x359   :  { %v2678_v6 = vmax.f32 %v2632_v61, 0.0  ;;  %v2680_v7 = vmax.f32 %v2673_v0, 0.0  ;;  %v6157_v20 = vpack.c.bf16 %v2677_v1, %v2677_v1  ;;  %v6159_v11 = vpack.c.bf16 %v2679_v3, %v2679_v3  ;;  %v4926_v56 = vld [vmem:[%s6419_s7 + $0x100] ss:$20 sps:$4 sm:$0xff]   ;;  %v4930_v61 = vld [vmem:[%s6419_s7 + $0x218] ss:$20 sps:$4 sm:$0xff]  }
 0x35a   :  { %v2634_v58 = vpop.f32.mrf.mxu1  ;;  %v2675_v8 = vpop.f32.mrf.mxu0  ;;  %v4929_v60 = vld [vmem:[%s6419_s7 + $0x1ec] ss:$20 sps:$4 sm:$0xff]   ;;  %v4927_v0 = vld [vmem:[%s6419_s7 + $0x1e8] ss:$20 sps:$4 sm:$0xff]   ;;  %v4934_v3 = vld [vmem:[%s6419_s7 + $0x1c4] ss:$20 sps:$4 sm:$0xff]  }
 0x35b   :  { %v6147_v9 = vpack.c.bf16 %v2678_v6, %v2678_v6  ;;  %v6149_v14 = vpack.c.bf16 %v2680_v7, %v2680_v7  ;;  %v4931_v1 = vld [vmem:[%s6419_s7 + $0xd8] ss:$20 sps:$4 sm:$0xff]   ;;  %v4935_v4 = vld [vmem:[%s6419_s7 + $0x1f0] ss:$20 sps:$4 sm:$0xff]   ;;  %v4932_v5 = vld [vmem:[%s6419_s7 + $0x1c0] ss:$20 sps:$4 sm:$0xff]  }
 0x35c   :  { %v4936_v6 = vld [vmem:[%s6419_s7 + $0xb0] ss:$20 sps:$4 sm:$0xff]   ;;  %v4940_v58 = vld [vmem:[%s6419_s7 + $0x1c8] ss:$20 sps:$4 sm:$0xff]   ;;  %v4937_v8 = vld [vmem:[%s6419_s7 + $0x198] ss:$20 sps:$4 sm:$0xff]  }
 0x35d   :  { %3548 = vmatprep.mubr.bf16.mxu1 %v6147_v9  ;;  %4230 = vmatprep.mubr.msk.bf16.mxu0 %vm3512_vm4, %v6149_v14  ;;  %v4939_v7 = vld [vmem:[%s6419_s7 + $0x19c] ss:$20 sps:$4 sm:$0xff]  }
 0x35e   :  { %3549 = vmatmul.mubr.bf16.vlgmr.msra.gmra.mxu1 %v6157_v20  ;;  %3590 = vmatmul.mubr.bf16.vlgmr.msra.gmra.mxu0 %v6159_v11 }
 0x35f   :  { %3599 = vmatpush1.bf16.msra.mxu0 %v4863_v10  ;;  %3640 = vmatpush1.bf16.msra.mxu1 %v4866_v19  ;;  %v4944_v10 = vld [vmem:[%s6419_s7 + $0x174] ss:$20 sps:$4 sm:$0xff]  }
 0x360   :  { %3630 = vmatprep.mubr.bf16.mxu0 %v6147_v9  ;;  %4231 = vmatprep.mubr.msk.bf16.mxu1 %vm3512_vm4, %v6149_v14  ;;  %v4945_v19 = vld [vmem:[%s6419_s7 + $0x1a0] ss:$20 sps:$4 sm:$0xff]  }
 0x361   :  { %3600 = vmatprep.subr.bf16.mxu0 %v4871_v12  ;;  %3641 = vmatprep.subr.bf16.mxu1 %v4874_v13  ;;  %v4942_v12 = vld [vmem:[%s6419_s7 + $0x170] ss:$20 sps:$4 sm:$0xff]   ;;  %v4946_v13 = vld [vmem:[%s6419_s7 + $0x60] ss:$20 sps:$4 sm:$0xff]  }
 0x363   :  { %3601 = vmatpush1.bf16.msra.mxu0 %v4869_v15  ;;  %3642 = vmatpush1.bf16.msra.mxu1 %v4872_v16  ;;  %v4949_v15 = vld [vmem:[%s6419_s7 + $0x14c] ss:$20 sps:$4 sm:$0xff]  }
 0x364   :  { %3602 = vmatprep.subr.bf16.mxu0 %v4877_v17  ;;  %3643 = vmatprep.subr.bf16.mxu1 %v4880_v18  ;;  %v4950_v16 = vld [vmem:[%s6419_s7 + $0x178] ss:$20 sps:$4 sm:$0xff]   ;;  %v4947_v17 = vld [vmem:[%s6419_s7 + $0x148] ss:$20 sps:$4 sm:$0xff]  }
 0x365   :  { %v4951_v18 = vld [vmem:[%s6419_s7 + $0x38] ss:$20 sps:$4 sm:$0xff]  }
 0x367   :  { %3603 = vmatpush1.bf16.msra.mxu0 %v4875_v21  ;;  %3644 = vmatpush1.bf16.msra.mxu1 %v4878_v22  ;;  %v4952_v21 = vld [vmem:[%s6419_s7 + $0x150] ss:$20 sps:$4 sm:$0xff]  }
 0x368   :  { %3604 = vmatprep.subr.bf16.mxu0 %v4883_v25  ;;  %3645 = vmatprep.subr.bf16.mxu1 %v4886_v26  ;;  %v4953_v22 = vld [vmem:[%s6419_s7 + $0x10] ss:$20 sps:$4 sm:$0xff]   ;;  %v4954_v25 = vld [vmem:[%s6419_s7 + $0x3a8] ss:$20 sps:$4 sm:$0xff]   ;;  %v4955_v26 = vld [vmem:[%s6419_s7 + $0x380] ss:$20 sps:$4 sm:$0xff]  }
 0x36b   :  { %3605 = vmatpush1.bf16.msra.mxu0 %v4881_v27  ;;  %3646 = vmatpush1.bf16.msra.mxu1 %v4884_v28  ;;  %v4956_v27 = vld [vmem:[%s6419_s7 + $0x358] ss:$20 sps:$4 sm:$0xff]   ;;  %v4957_v28 = vld [vmem:[%s6419_s7 + $0x330] ss:$20 sps:$4 sm:$0xff]  }
 0x36c   :  { %3606 = vmatprep.subr.bf16.mxu0 %v4889_v29  ;;  %3647 = vmatprep.subr.bf16.mxu1 %v4892_v30  ;;  %v4960_v29 = vld [vmem:[%s6419_s7 + $0x2b8] ss:$20 sps:$4 sm:$0xff]   ;;  %v4961_v30 = vld [vmem:[%s6419_s7 + $0x290] ss:$20 sps:$4 sm:$0xff]  }
 0x36f   :  { %3607 = vmatpush1.bf16.msra.mxu0 %v4887_v31  ;;  %3648 = vmatpush1.bf16.msra.mxu1 %v4890_v32  ;;  %v4962_v31 = vld [vmem:[%s6419_s7 + $0x3d0] ss:$20 sps:$4 sm:$0xff]  }
 0x370   :  { %3608 = vmatprep.subr.bf16.mxu0 %v4895_v33  ;;  %3649 = vmatprep.subr.bf16.mxu1 %v4898_v34  ;;  %v2835_v32 = vld [vmem:[%s6422_s8] sm:$0x1f] }
 0x371   :  { %v2840_v33 = vrot.slane %v2835_v32, %v5885_v57  ;;  %v2844_v34 = vrot.slane %v2835_v32, %v5893_v59 }
 0x373   :  { %3609 = vmatpush1.bf16.msra.mxu0 %v4893_v35  ;;  %3650 = vmatpush1.bf16.msra.mxu1 %v4896_v36 }
 0x374   :  { %3610 = vmatprep.subr.bf16.mxu0 %v4901_v38  ;;  %3651 = vmatprep.subr.bf16.mxu1 %v4904_v39 }
 0x377   :  { %3611 = vmatpush1.bf16.msra.mxu0 %v4899_v40  ;;  %3652 = vmatpush1.bf16.msra.mxu1 %v4902_v41 }
 0x378   :  { %3612 = vmatprep.subr.bf16.mxu0 %v4907_v43  ;;  %3653 = vmatprep.subr.bf16.mxu1 %v4910_v62 }
 0x37b   :  { %3613 = vmatpush1.bf16.msra.mxu0 %v4905_v44  ;;  %3654 = vmatpush1.bf16.msra.mxu1 %v4908_v63 }
 0x37c   :  { %3614 = vmatprep.subr.bf16.mxu0 %v4913_v45  ;;  %3669 = vmatprep.subr.bf16.mxu1 %v4916_v2 }
 0x37f   :  { %3615 = vmatpush2.bf16.msra.mxu0 %v4911_v46  ;;  %3670 = vmatpush2.bf16.msra.mxu1 %v4914_v47 }
 0x380   :  { %3616 = vmatprep.subr.bf16.mxu0 %v4919_v48  ;;  %4348 = vmatprep.subr.bf16.mxu1 %v4920_v49  ;;  %v2848_v49 = vrot.slane %v2835_v32, %v5912_v23 }
 0x382   :  { %3672 = vmatmul.mubr.bf16.vlgmr.msra.gmra.mxu1 %v6159_v11 }
 0x383   :  { %3617 = vmatpush2.bf16.msra.mxu0 %v4917_v50  ;;  %4349 = vmatpush3.bf16.msra.mxu1 %v4921_v52  ;;  %v2852_v50 = vrot.slane %v2835_v32, %v5915_v24 }
 0x384   :  { %3712 = vmatprep.mubr.bf16.mxu1 %v6147_v9  ;;  %3618 = vmatprep.subr.bf16.mxu0 %v4924_v53  ;;  %v4941_v9 = vld [vmem:[%s6419_s7 + $0x88] ss:$20 sps:$4 sm:$0xff]  }
 0x385   :  { %4350 = vmatprep.subr.bf16.mxu1 %v4925_v54 }
 0x387   :  { %3619 = vmatpush2.bf16.msra.mxu0 %v4922_v55  ;;  %4351 = vmatpush3.bf16.msra.mxu1 %v4926_v56 }
 0x388   :  { %3620 = vmatprep.subr.bf16.mxu0 %v4929_v60  ;;  %4352 = vmatprep.subr.bf16.mxu1 %v4930_v61 }
 0x38b   :  { %3621 = vmatpush2.bf16.msra.mxu0 %v4927_v0  ;;  %4353 = vmatpush3.bf16.msra.mxu1 %v4931_v1 }
 0x38c   :  { %3622 = vmatprep.subr.bf16.mxu0 %v4934_v3  ;;  %4354 = vmatprep.subr.bf16.mxu1 %v4935_v4 }
 0x38f   :  { %3623 = vmatpush2.bf16.msra.mxu0 %v4932_v5  ;;  %4355 = vmatpush3.bf16.msra.mxu1 %v4936_v6  ;;  %v4977_v6 = vmov 1983009808  }
 0x390   :  { %3624 = vmatprep.subr.bf16.mxu0 %v4939_v7  ;;  %4356 = vmatprep.subr.bf16.mxu1 %v4940_v58  ;;  %v3773_v7 = vunpack.c.l.s4 %v4977_v6 }
 0x392   :  { %v3774_v58 = vunpack.c.0.s8 %v3773_v7 }
 0x393   :  { %3625 = vmatpush2.bf16.msra.mxu0 %v4937_v8  ;;  %4357 = vmatpush3.bf16.msra.mxu1 %v4941_v9 }
 0x394   :  { %3626 = vmatprep.subr.bf16.mxu0 %v4944_v10  ;;  %4358 = vmatprep.subr.bf16.mxu1 %v4945_v19  ;;  %v3777_v24 = vsub.s32 %v3774_v58, %v5145_v42 }
 0x397   :  { %3627 = vmatpush2.bf16.msra.mxu0 %v4942_v12  ;;  %4359 = vmatpush3.bf16.msra.mxu1 %v4946_v13 }
 0x398   :  { %3628 = vmatprep.subr.bf16.mxu0 %v4949_v15  ;;  %4360 = vmatprep.subr.bf16.mxu1 %v4950_v16  ;;  %v2856_v15 = vrot.slane %v2835_v32, %v342_v51 }
 0x39b   :  { %3629 = vmatpush2.bf16.msra.mxu0 %v4947_v17  ;;  %4361 = vmatpush3.bf16.msra.mxu1 %v4951_v18 }
 0x39c   :  { %4362 = vmatprep.subr.bf16.mxu1 %v4952_v21  ;;  %3720 = vmatprep.subr.bf16.mxu0 %v4976_v37 }
 0x39e   :  { %3631 = vmatmul.mubr.bf16.vlgmr.msra.gmra.mxu0 %v6157_v20 }
 0x39f   :  { %4363 = vmatpush3.bf16.msra.mxu1 %v4953_v22  ;;  %3721 = vmatpush1.bf16.msra.mxu0 %v4954_v25 }
 0x3a0   :  { %4232 = vmatprep.mubr.msk.bf16.mxu0 %vm3512_vm4, %v6149_v14  ;;  %3722 = vmatprep.subr.bf16.mxu0 %v4976_v37  ;;  %v4958_v14 = vld [vmem:[%s6419_s7 + $0x308] ss:$20 sps:$4 sm:$0xff]  }
 0x3a2   :  { %3713 = vmatmul.mubr.bf16.vlgmr.msra.gmra.mxu1 %v6157_v20  ;;  %v4959_v20 = vld [vmem:[%s6419_s7 + $0x2e0] ss:$20 sps:$4 sm:$0xff]  }
 0x3a3   :  { %3723 = vmatpush1.bf16.msra.mxu0 %v4955_v26 }
 0x3a4   :  { %3724 = vmatprep.subr.bf16.mxu0 %v4976_v37 }
 0x3a7   :  { %3725 = vmatpush1.bf16.msra.mxu0 %v4956_v27 }
 0x3a8   :  { %3726 = vmatprep.subr.bf16.mxu0 %v4976_v37 }
 0x3ab   :  { %3727 = vmatpush1.bf16.msra.mxu0 %v4957_v28 }
 0x3ac   :  { %3728 = vmatprep.subr.bf16.mxu0 %v4976_v37 }
 0x3af   :  { %3729 = vmatpush1.bf16.msra.mxu0 %v4958_v14 }
 0x3b0   :  { %3730 = vmatprep.subr.bf16.mxu0 %v4976_v37 }
 0x3b3   :  { %3731 = vmatpush1.bf16.msra.mxu0 %v4959_v20 }
 0x3b4   :  { %3732 = vmatprep.subr.bf16.mxu0 %v4976_v37 }
 0x3b7   :  { %3733 = vmatpush1.bf16.msra.mxu0 %v4960_v29 }
 0x3b8   :  { %3734 = vmatprep.subr.bf16.mxu0 %v4976_v37 }
 0x3bb   :  { %3735 = vmatpush1.bf16.msra.mxu0 %v4961_v30 }
 0x3bc   :  { %3750 = vmatprep.subr.bf16.mxu0 %v4976_v37 }
 0x3bf   :  { %3751 = vmatpush2.bf16.msra.mxu0 %v4962_v31 }
 0x3c2   :  { %3753 = vmatmul.mubr.bf16.vlgmr.msra.gmra.mxu0 %v6159_v11 }
 0x41e   :  { %v3550_v35 = vpop.f32.mrf.mxu1  ;;  %v3591_v36 = vpop.f32.mrf.mxu0 }
 0x41f   :  { %v3551_v38 = vadd.f32 %v3550_v35, %v2840_v33 }
 0x420   :  { %v3552_v39 = vpop.f32.mrf.mxu1  ;;  %v3593_v40 = vpop.f32.mrf.mxu0 }
 0x421   :  { %v3592_v41 = vadd.f32 %v3591_v36, %v3551_v38  ;;  %v3553_v43 = vadd.f32 %v3552_v39, %v2844_v34 }
 0x422   :  { %v3554_v62 = vpop.f32.mrf.mxu1  ;;  %v3595_v37 = vpop.f32.mrf.mxu0 }
 0x423   :  { %v3594_v44 = vadd.f32 %v3593_v40, %v3553_v43  ;;  %4963 = vtanh.f32 %v3592_v41 }
 0x424   :  { %v3555_v11 = vpop.f32.mrf.mxu1  ;;  %v3596_v63 = vpop.f32.mrf.mxu0 }
 0x425   :  { %4965 = vtanh.f32 %v3594_v44 }
 0x430   :  { %v4964_v45 = vpop.eup %4963 }
 0x432   :  { %v4966_v2 = vpop.eup %4965 }
 0x433   :  { %v3770_v46 = vcombine.low %v4964_v45, %v4966_v2 }
 0x435   :  { %v3778_v10 = vrot.slane %v3770_v46, %v3777_v24 }
 0x442   :  { %v3673_v57 = vpop.f32.mrf.mxu1 }
 0x444   :  { %v3675_v47 = vpop.f32.mrf.mxu1 }
 0x446   :  { %v3677_v59 = vpop.f32.mrf.mxu1 }
 0x448   :  { %v3678_v48 = vpop.f32.mrf.mxu1 }
 0x45e   :  { %v3632_v52 = vpop.f32.mrf.mxu0 }
 0x45f   :  { %v3633_v53 = vadd.f32 %v3632_v52, %v2848_v49 }
 0x460   :  { %v3634_v54 = vpop.f32.mrf.mxu0 }
 0x461   :  { %v3674_v55 = vadd.f32 %v3673_v57, %v3633_v53  ;;  %v3635_v56 = vadd.f32 %v3634_v54, %v2852_v50 }
 0x462   :  { %v3636_v60 = vpop.f32.mrf.mxu0  ;;  %v4364_v61 = vpop.f32.mrf.mxu1 }
 0x463   :  { %v3676_v0 = vadd.f32 %v3675_v47, %v3635_v56  ;;  %4967 = vtanh.f32 %v3674_v55 }
 0x464   :  { %v3637_v1 = vpop.f32.mrf.mxu0  ;;  %v4365_v3 = vpop.f32.mrf.mxu1 }
 0x465   :  { %4969 = vtanh.f32 %v3676_v0  ;;  %v4366_v13 = vadd.f32 %v4365_v3, %v4364_v61 }
 0x466   :  { %v4367_v4 = vpop.f32.mrf.mxu1 }
 0x467   :  { %v3715_v16 = vadd.f32 %v4366_v13, %v2856_v15 }
 0x468   :  { %v4368_v5 = vpop.f32.mrf.mxu1 }
 0x470   :  { %v4968_v23 = vpop.eup %4967 }
 0x472   :  { %v4970_v8 = vpop.eup %4969 }
 0x473   :  { %v3771_v9 = vcombine.low %v4968_v23, %v4970_v8 }
 0x475   :  { %v3785_v19 = vrot.slane %v3771_v9, %v3777_v24 }
 0x477   :  { %v3786_v12 = vcombine.low %v3778_v10, %v3785_v19 }
 0x479   :  { %3796 = vst [vmem:[%s6423_s9] sm:$0xff] %v3786_v12 }
 0x482   :  { %v3754_v17 = vpop.f32.mrf.mxu0 }
 0x483   :  { %v3755_v18 = vadd.f32 %v3754_v17, %v3715_v16 }
 0x484   :  { %v3756_v21 = vpop.f32.mrf.mxu0 }
 0x485   :  { %4971 = vtanh.f32 %v3755_v18 }
 0x486   :  { %v3757_v22 = vpop.f32.mrf.mxu0 }
 0x488   :  { %v3758_v25 = vpop.f32.mrf.mxu0 }
 0x492   :  { %v4972_v26 = vpop.eup %4971 }
 0x493   :  { %v3793_v27 = vrot.slane %v4972_v26, %v3777_v24 }
 0x495   :  { %3798 = vst.msk [vmem:[%s6423_s9 + $0x8] sm:$0x3] %vm3797_vm5, %v3793_v27 }

</bundles_post_ra>
